<compile_context>
chip_gen: v7x
topology: tpu7x:2x2x1
jax: 0.10.0
libtpu: 0.0.40
codegen_flags: <defaults>
</compile_context>

<pallas_src>
import jax
import jax.numpy as jnp
from jax.experimental import pallas as pl
from jax.experimental.pallas import tpu as pltpu


def _default_vmem_limit():
    """Generation-aware scoped-VMEM budget (larger on 128 MiB parts, tighter on v7x)."""
    try:
        cap = int(pltpu.get_tpu_info().vmem_capacity_bytes)
    except Exception:
        cap = 64 << 20
    return max(32 << 20, min((cap * 3) // 4, 100 << 20))


_VMEM_LIMIT = _default_vmem_limit()


# ---------------------------------------------------------------------------
# Fused bidirectional LSTM recurrence kernel.
#   grid = (2, T // TT); axis 0 = direction ("parallel", shards TCs on v7x),
#   axis 1 = time chunk ("arbitrary", sequential recurrence).
# Per grid step:
#   * stream a (TT, Bp, I) slab of raw x, cast to bf16 in-kernel,
#   * project the whole chunk with one (TT*Bp, I)@(I, 4H) MXU GEMM (f32 acc),
#   * run TT recurrence steps against the VMEM-resident W_hh^T with the h/c
#     carries living in VMEM scratch,
#   * write a lane-dense (TT, Bp, H) output slab (full (8,128) tiles per step).
# ---------------------------------------------------------------------------
def _bilstm_kernel(x_ref, wih_ref, b_ref, whh_ref, h0_ref, c0_ref,
                   out_ref, h_sc, c_sc):
    @pl.when(pl.program_id(1) == 0)          # first chunk of this direction
    def _():
        h_sc[...] = h0_ref[...]
        c_sc[...] = c0_ref[...]

    tt, bp, in_dim = x_ref.shape
    hidden = h_sc.shape[-1]

    # Whole-chunk input projection: one big MXU GEMM, bf16 operands, f32 acc.
    # (tt, bp, I) -> (tt*bp, I) is a tile-aligned leading-dim merge (no-op layout).
    xb = x_ref[...].astype(jnp.bfloat16).reshape(tt * bp, in_dim)
    xw = jnp.dot(xb, wih_ref[...], preferred_element_type=jnp.float32) + b_ref[...]

    whh = whh_ref[...]
    h = h_sc[...]
    c = c_sc[...]

    def sig(v):                               # one EUP push instead of exp+recip
        return 0.5 * jnp.tanh(0.5 * v) + 0.5

    # TODO(synk): training-mode dropout on tanh(g) not implemented (eval path).
    for t in range(tt):                       # TT is small & static (unrolled)
        gates = xw[t * bp:(t + 1) * bp, :] + jnp.dot(
            h.astype(jnp.bfloat16), whh, preferred_element_type=jnp.float32)
        i = gates[:, 0 * hidden:1 * hidden]
        f = gates[:, 1 * hidden:2 * hidden]
        g = gates[:, 2 * hidden:3 * hidden]
        o = gates[:, 3 * hidden:4 * hidden]
        c = sig(f) * c + sig(i) * jnp.tanh(g)
        h = jnp.tanh(c) * sig(o)
        out_ref[t] = h.astype(out_ref.dtype)

    h_sc[...] = h
    c_sc[...] = c


def _bilstm_scan(x_all, wih_all, b_all, whh_all, h0_all, c0_all, tt):
    """x_all: (2, T, Bp, I) f32 -> (2, T, Bp, H) f32 (both directions in one call)."""
    _, t_len, bp, in_dim = x_all.shape
    hidden = whh_all.shape[1]
    h4 = 4 * hidden
    return pl.pallas_call(
        _bilstm_kernel,
        out_shape=jax.ShapeDtypeStruct((2, t_len, bp, hidden), jnp.float32),
        grid_spec=pltpu.PrefetchScalarGridSpec(
            num_scalar_prefetch=0,
            grid=(2, t_len // tt),
            in_specs=[
                # streamed raw x chunk
                pl.BlockSpec((None, tt, bp, in_dim), lambda d, c: (d, c, 0, 0)),
                # VMEM-resident per-direction params / initial state
                pl.BlockSpec((None, in_dim, h4), lambda d, c: (d, 0, 0)),
                pl.BlockSpec((None, 1, h4), lambda d, c: (d, 0, 0)),
                pl.BlockSpec((None, hidden, h4), lambda d, c: (d, 0, 0)),
                pl.BlockSpec((None, bp, hidden), lambda d, c: (d, 0, 0)),
                pl.BlockSpec((None, bp, hidden), lambda d, c: (d, 0, 0)),
            ],
            out_specs=pl.BlockSpec((None, tt, bp, hidden), lambda d, c: (d, c, 0, 0)),
            scratch_shapes=[pltpu.VMEM((bp, hidden), jnp.float32),   # h carry
                            pltpu.VMEM((bp, hidden), jnp.float32)],  # c carry
        ),
        compiler_params=pltpu.CompilerParams(
            dimension_semantics=("parallel", "arbitrary"),
            vmem_limit_bytes=_VMEM_LIMIT,
        ),
    )(x_all, wih_all, b_all, whh_all, h0_all, c0_all)


# ---------------------------------------------------------------------------
# Parameter handling (layout prep done ONCE, never per call)
# ---------------------------------------------------------------------------
def init_cell_params(key, input_size, hidden_size):
    """PyTorch-layout params mirroring reset_parameters():
    W_ih (4H, I) xavier_uniform, b_ih (4H,) zeros, W_hh (4H, H) orthogonal."""
    k1, k2 = jax.random.split(key)
    h4 = 4 * hidden_size
    bound = (6.0 / (h4 + input_size)) ** 0.5
    w_ih = jax.random.uniform(k1, (h4, input_size), jnp.float32, -bound, bound)
    b_ih = jnp.zeros((h4,), jnp.float32)
    a = jax.random.normal(k2, (h4, hidden_size), jnp.float32)
    q, r = jnp.linalg.qr(a)
    w_hh = q * jnp.sign(jnp.diagonal(r))[None, :]
    return w_ih, b_ih, w_hh


def prepare_bidir_params(raw_f, raw_b):
    """One-time layout prep: transpose to (K, 4H), cast MXU operands to bf16,
    stack forward/backward on a leading direction axis."""
    def prep(w_ih, b_ih, w_hh):
        return (jnp.asarray(w_ih.T, jnp.bfloat16),              # (I, 4H)
                jnp.asarray(b_ih, jnp.float32).reshape(1, -1),  # (1, 4H)
                jnp.asarray(w_hh.T, jnp.bfloat16))              # (H, 4H)
    wf, bf_, whf = prep(*raw_f)
    wb, bb_, whb = prep(*raw_b)
    return (jnp.stack([wf, wb], axis=0),     # (2, I, 4H) bf16
            jnp.stack([bf_, bb_], axis=0),   # (2, 1, 4H) f32
            jnp.stack([whf, whb], axis=0))   # (2, H, 4H) bf16


# ---------------------------------------------------------------------------
# Full bidirectional LSTM forward (matches LSTM.forward(inputs_emb, mask, hidden))
# ---------------------------------------------------------------------------
def lstm_forward(params, inputs_emb, mask, hidden=None, chunk=8):
    """inputs_emb: (B, T, I), mask: (B, T) -> (B, T, 2H). Eval-mode forward."""
    wih_all, b_all, whh_all = params
    b, t_len, _ = inputs_emb.shape
    hidden_size = whh_all.shape[1]

    if hidden is None:
        h0 = jnp.zeros((b, hidden_size), jnp.float32)
        c0 = jnp.zeros((b, hidden_size), jnp.float32)
    else:
        h0, c0 = hidden
        h0 = h0.astype(jnp.float32)
        c0 = c0.astype(jnp.float32)

    bp = -(-b // 8) * 8                      # pad batch to a sublane multiple of 8
    pad = bp - b

    # Largest chunk size <= `chunk` that divides T.
    tt = max(1, min(chunk, t_len))
    while t_len % tt:
        tt -= 1

    # Sentence-rotation indices of the module; the backward-direction time
    # reversal is folded INTO the gather indices (no [::-1] HBM passes).
    lengths = mask.astype(jnp.int32).sum(axis=1)                   # (B,)
    ar = jnp.arange(t_len, dtype=jnp.int32)
    index_b = (lengths[:, None] + ar[None, :]) % t_len             # module's index_b
    index_f = (t_len - lengths[:, None] + ar[None, :]) % t_len     # module's index_f
    idx_scan = index_b[:, ::-1]              # gather + time-reverse in one pass
    idx_out = (t_len - 1) - index_f          # un-reverse + index_f gather in one pass
    batch_idx = jnp.arange(b, dtype=jnp.int32)

    # Time-major scan inputs for both directions, stacked on a direction axis.
    x_f = jnp.transpose(inputs_emb, (1, 0, 2))                     # (T, B, I)
    x_b = inputs_emb[batch_idx[None, :], idx_scan.T, :]            # (T, B, I)
    x_all = jnp.stack([x_f, x_b], axis=0)                          # (2, T, B, I)
    if pad:
        x_all = jnp.pad(x_all, ((0, 0), (0, 0), (0, pad), (0, 0)))
        h0 = jnp.pad(h0, ((0, pad), (0, 0)))
        c0 = jnp.pad(c0, ((0, pad), (0, 0)))
    h0_all = jnp.stack([h0, h0], axis=0)                           # (2, Bp, H)
    c0_all = jnp.stack([c0, c0], axis=0)

    out_all = _bilstm_scan(x_all, wih_all, b_all, whh_all, h0_all, c0_all, tt)

    out_f = jnp.transpose(out_all[0, :, :b, :], (1, 0, 2))         # (B, T, H)
    out_b = out_all[1][idx_out, batch_idx[:, None], :]             # (B, T, H)
    return jnp.concatenate([out_f, out_b], axis=-1)


# ---------------------------------------------------------------------------
# Pure-JAX reference (literal port of the PyTorch forward)
# ---------------------------------------------------------------------------
def _ref_cell(x, state, w_ih, b_ih, w_hh, mm_dtype):
    h, c = state
    vec = (
        jnp.dot(x.astype(mm_dtype), w_ih.T.astype(mm_dtype),
                preferred_element_type=jnp.float32)
        + b_ih
        + jnp.dot(h.astype(mm_dtype), w_hh.T.astype(mm_dtype),
                  preferred_element_type=jnp.float32)
    )
    i, f, g, o = jnp.split(vec, 4, axis=1)
    new_c = jax.nn.sigmoid(f) * c + jax.nn.sigmoid(i) * jnp.tanh(g)
    new_h = jnp.tanh(new_c) * jax.nn.sigmoid(o)
    return new_h, (new_h, new_c)


def _reference_lstm(inputs_emb, mask, hidden, raw_f, raw_b, mm_dtype):
    b, t_len, _ = inputs_emb.shape
    h = raw_f[2].shape[1]
    if hidden is None:
        z = jnp.zeros((b, h), jnp.float32)
        hidden = (z, z)

    inputs = jnp.transpose(inputs_emb, (1, 0, 2))
    outs, state = [], hidden
    for t in range(t_len):
        o, state = _ref_cell(inputs[t], state, *raw_f, mm_dtype)
        outs.append(o)
    out_f = jnp.stack(outs, 0).transpose(1, 0, 2)

    lengths = mask.astype(jnp.int32).sum(axis=1)
    index_b, index_f = [], []
    for bi in range(b):
        sl = int(lengths[bi])
        index_b.append(list(range(sl, t_len)) + list(range(sl)))
        index_f.append(list(range(t_len - sl, t_len)) + list(range(t_len - sl)))
    index_b = jnp.asarray(index_b, jnp.int32)
    index_f = jnp.asarray(index_f, jnp.int32)

    inputs_back_emb = jnp.take_along_axis(
        inputs_emb, jnp.broadcast_to(index_b[:, :, None], inputs_emb.shape), axis=1)
    inputs_back = jnp.transpose(inputs_back_emb, (1, 0, 2))
    outs_b, state = [], hidden
    for t in reversed(range(t_len)):
        o, state = _ref_cell(inputs_back[t], state, *raw_b, mm_dtype)
        outs_b.append(o)
    outs_b = list(reversed(outs_b))
    out_b = jnp.stack(outs_b, 0).transpose(1, 0, 2)
    out_b = jnp.take_along_axis(
        out_b, jnp.broadcast_to(index_f[:, :, None], out_b.shape), axis=1)

    return jnp.concatenate([out_f, out_b], axis=-1)


if __name__ == "__main__":
    batch, seq_len = 6, 16
    input_size, hidden_size = 128, 128   # H multiple of 128 -> lane-dense gates/output

    key = jax.random.PRNGKey(0)
    k_x, k_len, k_f, k_b = jax.random.split(key, 4)

    inputs_emb = jax.random.normal(k_x, (batch, seq_len, input_size), jnp.float32)
    lengths = jax.random.randint(k_len, (batch,), 1, seq_len + 1)
    mask = (jnp.arange(seq_len)[None, :] < lengths[:, None]).astype(jnp.float32)

    raw_f = init_cell_params(k_f, input_size, hidden_size)
    raw_b = init_cell_params(k_b, input_size, hidden_size)
    params = prepare_bidir_params(raw_f, raw_b)      # one-time layout prep

    fwd = jax.jit(lstm_forward, static_argnames=("chunk",))
    out = jax.block_until_ready(fwd(params, inputs_emb, mask))
    assert out.shape == (batch, seq_len, 2 * hidden_size), out.shape

    # Tight check vs a reference using the same bf16 MXU operands.
    ref_bf16 = _reference_lstm(inputs_emb, mask, None, raw_f, raw_b, jnp.bfloat16)
    err_tight = float(jnp.max(jnp.abs(out - ref_bf16)))
    assert jnp.allclose(out, ref_bf16, atol=5e-3, rtol=5e-3), err_tight

    # Loose sanity check vs the full-f32 port of the PyTorch module.
    ref_f32 = _reference_lstm(inputs_emb, mask, None, raw_f, raw_b, jnp.float32)
    err_loose = float(jnp.max(jnp.abs(out - ref_f32)))
    assert jnp.allclose(out, ref_f32, atol=1e-1, rtol=1e-1), err_loose

    print("KERNEL_OK")
</pallas_src>

<mosaic_0001>
module attributes {stable_mosaic.version = 11 : i64} {
  func.func @_bilstm_kernel(%arg0: i32, %arg1: i32, %arg2: memref<1x8x8x128xf32, #tpu.memory_space<vmem>>, %arg3: memref<1x128x512xbf16, #tpu.memory_space<vmem>>, %arg4: memref<1x1x512xf32, #tpu.memory_space<vmem>>, %arg5: memref<1x128x512xbf16, #tpu.memory_space<vmem>>, %arg6: memref<1x8x128xf32, #tpu.memory_space<vmem>>, %arg7: memref<1x8x128xf32, #tpu.memory_space<vmem>>, %arg8: memref<1x8x8x128xf32, #tpu.memory_space<vmem>>, %arg9: memref<8x128xf32, #tpu.memory_space<vmem>>, %arg10: memref<8x128xf32, #tpu.memory_space<vmem>>) attributes {dimension_semantics = [#tpu.dimension_semantics<parallel>, #tpu.dimension_semantics<arbitrary>], iteration_bounds = array<i64: 2, 2>, scalar_prefetch = 0 : i64, scratch_operands = 2 : i64, tpu.core_type = #tpu.core_type<tc>, window_params = [{transform_indices = @transform_0, window_bounds = array<i64: 1, 8, 8, 128>}, {transform_indices = @transform_1, window_bounds = array<i64: 1, 128, 512>}, {transform_indices = @transform_2, window_bounds = array<i64: 1, 1, 512>}, {transform_indices = @transform_3, window_bounds = array<i64: 1, 128, 512>}, {transform_indices = @transform_4, window_bounds = array<i64: 1, 8, 128>}, {transform_indices = @transform_5, window_bounds = array<i64: 1, 8, 128>}, {transform_indices = @transform_6, window_bounds = array<i64: 1, 8, 8, 128>}]} {
    %c0_i32 = arith.constant 0 : i32
    %0 = arith.cmpi eq, %arg1, %c0_i32 : i32
    %1 = arith.extui %0 : i1 to i32
    %c0_i32_0 = arith.constant 0 : i32
    %2 = arith.cmpi ne, %1, %c0_i32_0 : i32
    scf.if %2 {
      %c0_126 = arith.constant 0 : index
      %c0_127 = arith.constant 0 : index
      %c0_128 = arith.constant 0 : index
      %324 = vector.load %arg6[%c0_126, %c0_127, %c0_128] : memref<1x8x128xf32, #tpu.memory_space<vmem>>, vector<1x8x128xf32>
      %325 = vector.shape_cast %324 : vector<1x8x128xf32> to vector<8x128xf32>
      %c0_129 = arith.constant 0 : index
      %c0_130 = arith.constant 0 : index
      %326 = vector.load %arg9[%c0_129, %c0_130] : memref<8x128xf32, #tpu.memory_space<vmem>>, vector<8x128xf32>
      tpu.vector_store %arg9[%c0_129, %c0_130], %325 {strides = array<i32>} : memref<8x128xf32, #tpu.memory_space<vmem>>, vector<8x128xf32>,
      %c0_131 = arith.constant 0 : index
      %c0_132 = arith.constant 0 : index
      %c0_133 = arith.constant 0 : index
      %327 = vector.load %arg7[%c0_131, %c0_132, %c0_133] : memref<1x8x128xf32, #tpu.memory_space<vmem>>, vector<1x8x128xf32>
      %328 = vector.shape_cast %327 : vector<1x8x128xf32> to vector<8x128xf32>
      %c0_134 = arith.constant 0 : index
      %c0_135 = arith.constant 0 : index
      %329 = vector.load %arg10[%c0_134, %c0_135] : memref<8x128xf32, #tpu.memory_space<vmem>>, vector<8x128xf32>
      tpu.vector_store %arg10[%c0_134, %c0_135], %328 {strides = array<i32>} : memref<8x128xf32, #tpu.memory_space<vmem>>, vector<8x128xf32>,
    } else {
    }
    %c0 = arith.constant 0 : index
    %c0_1 = arith.constant 0 : index
    %c0_2 = arith.constant 0 : index
    %c0_3 = arith.constant 0 : index
    %3 = vector.load %arg2[%c0, %c0_1, %c0_2, %c0_3] : memref<1x8x8x128xf32, #tpu.memory_space<vmem>>, vector<1x8x8x128xf32>
    %4 = vector.shape_cast %3 : vector<1x8x8x128xf32> to vector<8x8x128xf32>
    %5 = arith.truncf %4 : vector<8x8x128xf32> to vector<8x8x128xbf16>
    %6 = vector.shape_cast %5 : vector<8x8x128xbf16> to vector<64x128xbf16>
    %c0_4 = arith.constant 0 : index
    %c0_5 = arith.constant 0 : index
    %c0_6 = arith.constant 0 : index
    %7 = vector.load %arg3[%c0_4, %c0_5, %c0_6] : memref<1x128x512xbf16, #tpu.memory_space<vmem>>, vector<1x128x512xbf16>
    %8 = vector.shape_cast %7 : vector<1x128x512xbf16> to vector<128x512xbf16>
    %cst = arith.constant dense<0.000000e+00> : vector<64x512xf32>
    %9 = tpu.matmul %6, %8, %cst {dimension_numbers = #tpu.dot_dimension_numbers<[1], [0], [0], [1], [0, 0, 1, 1], [], []>} : vector<64x128xbf16>, vector<128x512xbf16>, vector<64x512xf32> -> vector<64x512xf32>
    %c0_7 = arith.constant 0 : index
    %c0_8 = arith.constant 0 : index
    %c0_9 = arith.constant 0 : index
    %10 = vector.load %arg4[%c0_7, %c0_8, %c0_9] : memref<1x1x512xf32, #tpu.memory_space<vmem>>, vector<1x1x512xf32>
    %11 = vector.shape_cast %10 : vector<1x1x512xf32> to vector<1x512xf32>
    %12 = vector.broadcast %11 : vector<1x512xf32> to vector<64x512xf32>
    %13 = arith.addf %9, %12 : vector<64x512xf32>
    %c0_10 = arith.constant 0 : index
    %c0_11 = arith.constant 0 : index
    %c0_12 = arith.constant 0 : index
    %14 = vector.load %arg5[%c0_10, %c0_11, %c0_12] : memref<1x128x512xbf16, #tpu.memory_space<vmem>>, vector<1x128x512xbf16>
    %15 = vector.shape_cast %14 : vector<1x128x512xbf16> to vector<128x512xbf16>
    %c0_13 = arith.constant 0 : index
    %c0_14 = arith.constant 0 : index
    %16 = vector.load %arg9[%c0_13, %c0_14] : memref<8x128xf32, #tpu.memory_space<vmem>>, vector<8x128xf32>
    %c0_15 = arith.constant 0 : index
    %c0_16 = arith.constant 0 : index
    %17 = vector.load %arg10[%c0_15, %c0_16] : memref<8x128xf32, #tpu.memory_space<vmem>>, vector<8x128xf32>
    %18 = vector.extract_strided_slice %13 {offsets = [0, 0], sizes = [8, 512], strides = [1, 1]} : vector<64x512xf32> to vector<8x512xf32>
    %19 = arith.truncf %16 : vector<8x128xf32> to vector<8x128xbf16>
    %cst_17 = arith.constant dense<0.000000e+00> : vector<8x512xf32>
    %20 = tpu.matmul %19, %15, %cst_17 {dimension_numbers = #tpu.dot_dimension_numbers<[1], [0], [0], [1], [0, 0, 1, 1], [], []>} : vector<8x128xbf16>, vector<128x512xbf16>, vector<8x512xf32> -> vector<8x512xf32>
    %21 = arith.addf %18, %20 : vector<8x512xf32>
    %22 = vector.extract_strided_slice %21 {offsets = [0, 0], sizes = [8, 128], strides = [1, 1]} : vector<8x512xf32> to vector<8x128xf32>
    %23 = vector.extract_strided_slice %21 {offsets = [0, 128], sizes = [8, 128], strides = [1, 1]} : vector<8x512xf32> to vector<8x128xf32>
    %24 = vector.extract_strided_slice %21 {offsets = [0, 256], sizes = [8, 128], strides = [1, 1]} : vector<8x512xf32> to vector<8x128xf32>
    %25 = vector.extract_strided_slice %21 {offsets = [0, 384], sizes = [8, 128], strides = [1, 1]} : vector<8x512xf32> to vector<8x128xf32>
    %cst_18 = arith.constant 5.000000e-01 : f32
    %26 = vector.broadcast %cst_18 : f32 to vector<8x128xf32>
    %27 = arith.mulf %26, %23 : vector<8x128xf32>
    %28 = math.tanh %27 : vector<8x128xf32>
    %cst_19 = arith.constant 5.000000e-01 : f32
    %29 = vector.broadcast %cst_19 : f32 to vector<8x128xf32>
    %30 = arith.mulf %29, %28 : vector<8x128xf32>
    %cst_20 = arith.constant 5.000000e-01 : f32
    %31 = vector.broadcast %cst_20 : f32 to vector<8x128xf32>
    %32 = arith.addf %30, %31 : vector<8x128xf32>
    %33 = arith.mulf %32, %17 : vector<8x128xf32>
    %cst_21 = arith.constant 5.000000e-01 : f32
    %34 = vector.broadcast %cst_21 : f32 to vector<8x128xf32>
    %35 = arith.mulf %34, %22 : vector<8x128xf32>
    %36 = math.tanh %35 : vector<8x128xf32>
    %cst_22 = arith.constant 5.000000e-01 : f32
    %37 = vector.broadcast %cst_22 : f32 to vector<8x128xf32>
    %38 = arith.mulf %37, %36 : vector<8x128xf32>
    %cst_23 = arith.constant 5.000000e-01 : f32
    %39 = vector.broadcast %cst_23 : f32 to vector<8x128xf32>
    %40 = arith.addf %38, %39 : vector<8x128xf32>
    %41 = math.tanh %24 : vector<8x128xf32>
    %42 = arith.mulf %40, %41 : vector<8x128xf32>
    %43 = arith.addf %33, %42 : vector<8x128xf32>
    %44 = math.tanh %43 : vector<8x128xf32>
    %cst_24 = arith.constant 5.000000e-01 : f32
    %45 = vector.broadcast %cst_24 : f32 to vector<8x128xf32>
    %46 = arith.mulf %45, %25 : vector<8x128xf32>
    %47 = math.tanh %46 : vector<8x128xf32>
    %cst_25 = arith.constant 5.000000e-01 : f32
    %48 = vector.broadcast %cst_25 : f32 to vector<8x128xf32>
    %49 = arith.mulf %48, %47 : vector<8x128xf32>
    %cst_26 = arith.constant 5.000000e-01 : f32
    %50 = vector.broadcast %cst_26 : f32 to vector<8x128xf32>
    %51 = arith.addf %49, %50 : vector<8x128xf32>
    %52 = arith.mulf %44, %51 : vector<8x128xf32>
    %c0_27 = arith.constant 0 : index
    %c0_28 = arith.constant 0 : index
    %c0_29 = arith.constant 0 : index
    %c0_30 = arith.constant 0 : index
    %53 = vector.load %arg8[%c0_27, %c0_28, %c0_29, %c0_30] : memref<1x8x8x128xf32, #tpu.memory_space<vmem>>, vector<1x1x8x128xf32>
    %54 = vector.shape_cast %53 : vector<1x1x8x128xf32> to vector<8x128xf32>
    %55 = vector.shape_cast %52 : vector<8x128xf32> to vector<1x1x8x128xf32>
    tpu.vector_store %arg8[%c0_27, %c0_28, %c0_29, %c0_30], %55 {strides = array<i32>} : memref<1x8x8x128xf32, #tpu.memory_space<vmem>>, vector<1x1x8x128xf32>,
    %56 = vector.extract_strided_slice %13 {offsets = [8, 0], sizes = [8, 512], strides = [1, 1]} : vector<64x512xf32> to vector<8x512xf32>
    %57 = arith.truncf %52 : vector<8x128xf32> to vector<8x128xbf16>
    %cst_31 = arith.constant dense<0.000000e+00> : vector<8x512xf32>
    %58 = tpu.matmul %57, %15, %cst_31 {dimension_numbers = #tpu.dot_dimension_numbers<[1], [0], [0], [1], [0, 0, 1, 1], [], []>} : vector<8x128xbf16>, vector<128x512xbf16>, vector<8x512xf32> -> vector<8x512xf32>
    %59 = arith.addf %56, %58 : vector<8x512xf32>
    %60 = vector.extract_strided_slice %59 {offsets = [0, 0], sizes = [8, 128], strides = [1, 1]} : vector<8x512xf32> to vector<8x128xf32>
    %61 = vector.extract_strided_slice %59 {offsets = [0, 128], sizes = [8, 128], strides = [1, 1]} : vector<8x512xf32> to vector<8x128xf32>
    %62 = vector.extract_strided_slice %59 {offsets = [0, 256], sizes = [8, 128], strides = [1, 1]} : vector<8x512xf32> to vector<8x128xf32>
    %63 = vector.extract_strided_slice %59 {offsets = [0, 384], sizes = [8, 128], strides = [1, 1]} : vector<8x512xf32> to vector<8x128xf32>
    %cst_32 = arith.constant 5.000000e-01 : f32
    %64 = vector.broadcast %cst_32 : f32 to vector<8x128xf32>
    %65 = arith.mulf %64, %61 : vector<8x128xf32>
    %66 = math.tanh %65 : vector<8x128xf32>
    %cst_33 = arith.constant 5.000000e-01 : f32
    %67 = vector.broadcast %cst_33 : f32 to vector<8x128xf32>
    %68 = arith.mulf %67, %66 : vector<8x128xf32>
    %cst_34 = arith.constant 5.000000e-01 : f32
    %69 = vector.broadcast %cst_34 : f32 to vector<8x128xf32>
    %70 = arith.addf %68, %69 : vector<8x128xf32>
    %71 = arith.mulf %70, %43 : vector<8x128xf32>
    %cst_35 = arith.constant 5.000000e-01 : f32
    %72 = vector.broadcast %cst_35 : f32 to vector<8x128xf32>
    %73 = arith.mulf %72, %60 : vector<8x128xf32>
    %74 = math.tanh %73 : vector<8x128xf32>
    %cst_36 = arith.constant 5.000000e-01 : f32
    %75 = vector.broadcast %cst_36 : f32 to vector<8x128xf32>
    %76 = arith.mulf %75, %74 : vector<8x128xf32>
    %cst_37 = arith.constant 5.000000e-01 : f32
    %77 = vector.broadcast %cst_37 : f32 to vector<8x128xf32>
    %78 = arith.addf %76, %77 : vector<8x128xf32>
    %79 = math.tanh %62 : vector<8x128xf32>
    %80 = arith.mulf %78, %79 : vector<8x128xf32>
    %81 = arith.addf %71, %80 : vector<8x128xf32>
    %82 = math.tanh %81 : vector<8x128xf32>
    %cst_38 = arith.constant 5.000000e-01 : f32
    %83 = vector.broadcast %cst_38 : f32 to vector<8x128xf32>
    %84 = arith.mulf %83, %63 : vector<8x128xf32>
    %85 = math.tanh %84 : vector<8x128xf32>
    %cst_39 = arith.constant 5.000000e-01 : f32
    %86 = vector.broadcast %cst_39 : f32 to vector<8x128xf32>
    %87 = arith.mulf %86, %85 : vector<8x128xf32>
    %cst_40 = arith.constant 5.000000e-01 : f32
    %88 = vector.broadcast %cst_40 : f32 to vector<8x128xf32>
    %89 = arith.addf %87, %88 : vector<8x128xf32>
    %90 = arith.mulf %82, %89 : vector<8x128xf32>
    %c0_41 = arith.constant 0 : index
    %c1 = arith.constant 1 : index
    %c0_42 = arith.constant 0 : index
    %c0_43 = arith.constant 0 : index
    %91 = vector.load %arg8[%c0_41, %c1, %c0_42, %c0_43] : memref<1x8x8x128xf32, #tpu.memory_space<vmem>>, vector<1x1x8x128xf32>
    %92 = vector.shape_cast %91 : vector<1x1x8x128xf32> to vector<8x128xf32>
    %93 = vector.shape_cast %90 : vector<8x128xf32> to vector<1x1x8x128xf32>
    tpu.vector_store %arg8[%c0_41, %c1, %c0_42, %c0_43], %93 {strides = array<i32>} : memref<1x8x8x128xf32, #tpu.memory_space<vmem>>, vector<1x1x8x128xf32>,
    %94 = vector.extract_strided_slice %13 {offsets = [16, 0], sizes = [8, 512], strides = [1, 1]} : vector<64x512xf32> to vector<8x512xf32>
    %95 = arith.truncf %90 : vector<8x128xf32> to vector<8x128xbf16>
    %cst_44 = arith.constant dense<0.000000e+00> : vector<8x512xf32>
    %96 = tpu.matmul %95, %15, %cst_44 {dimension_numbers = #tpu.dot_dimension_numbers<[1], [0], [0], [1], [0, 0, 1, 1], [], []>} : vector<8x128xbf16>, vector<128x512xbf16>, vector<8x512xf32> -> vector<8x512xf32>
    %97 = arith.addf %94, %96 : vector<8x512xf32>
    %98 = vector.extract_strided_slice %97 {offsets = [0, 0], sizes = [8, 128], strides = [1, 1]} : vector<8x512xf32> to vector<8x128xf32>
    %99 = vector.extract_strided_slice %97 {offsets = [0, 128], sizes = [8, 128], strides = [1, 1]} : vector<8x512xf32> to vector<8x128xf32>
    %100 = vector.extract_strided_slice %97 {offsets = [0, 256], sizes = [8, 128], strides = [1, 1]} : vector<8x512xf32> to vector<8x128xf32>
    %101 = vector.extract_strided_slice %97 {offsets = [0, 384], sizes = [8, 128], strides = [1, 1]} : vector<8x512xf32> to vector<8x128xf32>
    %cst_45 = arith.constant 5.000000e-01 : f32
    %102 = vector.broadcast %cst_45 : f32 to vector<8x128xf32>
    %103 = arith.mulf %102, %99 : vector<8x128xf32>
    %104 = math.tanh %103 : vector<8x128xf32>
    %cst_46 = arith.constant 5.000000e-01 : f32
    %105 = vector.broadcast %cst_46 : f32 to vector<8x128xf32>
    %106 = arith.mulf %105, %104 : vector<8x128xf32>
    %cst_47 = arith.constant 5.000000e-01 : f32
    %107 = vector.broadcast %cst_47 : f32 to vector<8x128xf32>
    %108 = arith.addf %106, %107 : vector<8x128xf32>
    %109 = arith.mulf %108, %81 : vector<8x128xf32>
    %cst_48 = arith.constant 5.000000e-01 : f32
    %110 = vector.broadcast %cst_48 : f32 to vector<8x128xf32>
    %111 = arith.mulf %110, %98 : vector<8x128xf32>
    %112 = math.tanh %111 : vector<8x128xf32>
    %cst_49 = arith.constant 5.000000e-01 : f32
    %113 = vector.broadcast %cst_49 : f32 to vector<8x128xf32>
    %114 = arith.mulf %113, %112 : vector<8x128xf32>
    %cst_50 = arith.constant 5.000000e-01 : f32
    %115 = vector.broadcast %cst_50 : f32 to vector<8x128xf32>
    %116 = arith.addf %114, %115 : vector<8x128xf32>
    %117 = math.tanh %100 : vector<8x128xf32>
    %118 = arith.mulf %116, %117 : vector<8x128xf32>
    %119 = arith.addf %109, %118 : vector<8x128xf32>
    %120 = math.tanh %119 : vector<8x128xf32>
    %cst_51 = arith.constant 5.000000e-01 : f32
    %121 = vector.broadcast %cst_51 : f32 to vector<8x128xf32>
    %122 = arith.mulf %121, %101 : vector<8x128xf32>
    %123 = math.tanh %122 : vector<8x128xf32>
    %cst_52 = arith.constant 5.000000e-01 : f32
    %124 = vector.broadcast %cst_52 : f32 to vector<8x128xf32>
    %125 = arith.mulf %124, %123 : vector<8x128xf32>
    %cst_53 = arith.constant 5.000000e-01 : f32
    %126 = vector.broadcast %cst_53 : f32 to vector<8x128xf32>
    %127 = arith.addf %125, %126 : vector<8x128xf32>
    %128 = arith.mulf %120, %127 : vector<8x128xf32>
    %c0_54 = arith.constant 0 : index
    %c2 = arith.constant 2 : index
    %c0_55 = arith.constant 0 : index
    %c0_56 = arith.constant 0 : index
    %129 = vector.load %arg8[%c0_54, %c2, %c0_55, %c0_56] : memref<1x8x8x128xf32, #tpu.memory_space<vmem>>, vector<1x1x8x128xf32>
    %130 = vector.shape_cast %129 : vector<1x1x8x128xf32> to vector<8x128xf32>
    %131 = vector.shape_cast %128 : vector<8x128xf32> to vector<1x1x8x128xf32>
    tpu.vector_store %arg8[%c0_54, %c2, %c0_55, %c0_56], %131 {strides = array<i32>} : memref<1x8x8x128xf32, #tpu.memory_space<vmem>>, vector<1x1x8x128xf32>,
    %132 = vector.extract_strided_slice %13 {offsets = [24, 0], sizes = [8, 512], strides = [1, 1]} : vector<64x512xf32> to vector<8x512xf32>
    %133 = arith.truncf %128 : vector<8x128xf32> to vector<8x128xbf16>
    %cst_57 = arith.constant dense<0.000000e+00> : vector<8x512xf32>
    %134 = tpu.matmul %133, %15, %cst_57 {dimension_numbers = #tpu.dot_dimension_numbers<[1], [0], [0], [1], [0, 0, 1, 1], [], []>} : vector<8x128xbf16>, vector<128x512xbf16>, vector<8x512xf32> -> vector<8x512xf32>
    %135 = arith.addf %132, %134 : vector<8x512xf32>
    %136 = vector.extract_strided_slice %135 {offsets = [0, 0], sizes = [8, 128], strides = [1, 1]} : vector<8x512xf32> to vector<8x128xf32>
    %137 = vector.extract_strided_slice %135 {offsets = [0, 128], sizes = [8, 128], strides = [1, 1]} : vector<8x512xf32> to vector<8x128xf32>
    %138 = vector.extract_strided_slice %135 {offsets = [0, 256], sizes = [8, 128], strides = [1, 1]} : vector<8x512xf32> to vector<8x128xf32>
    %139 = vector.extract_strided_slice %135 {offsets = [0, 384], sizes = [8, 128], strides = [1, 1]} : vector<8x512xf32> to vector<8x128xf32>
    %cst_58 = arith.constant 5.000000e-01 : f32
    %140 = vector.broadcast %cst_58 : f32 to vector<8x128xf32>
    %141 = arith.mulf %140, %137 : vector<8x128xf32>
    %142 = math.tanh %141 : vector<8x128xf32>
    %cst_59 = arith.constant 5.000000e-01 : f32
    %143 = vector.broadcast %cst_59 : f32 to vector<8x128xf32>
    %144 = arith.mulf %143, %142 : vector<8x128xf32>
    %cst_60 = arith.constant 5.000000e-01 : f32
    %145 = vector.broadcast %cst_60 : f32 to vector<8x128xf32>
    %146 = arith.addf %144, %145 : vector<8x128xf32>
    %147 = arith.mulf %146, %119 : vector<8x128xf32>
    %cst_61 = arith.constant 5.000000e-01 : f32
    %148 = vector.broadcast %cst_61 : f32 to vector<8x128xf32>
    %149 = arith.mulf %148, %136 : vector<8x128xf32>
    %150 = math.tanh %149 : vector<8x128xf32>
    %cst_62 = arith.constant 5.000000e-01 : f32
    %151 = vector.broadcast %cst_62 : f32 to vector<8x128xf32>
    %152 = arith.mulf %151, %150 : vector<8x128xf32>
    %cst_63 = arith.constant 5.000000e-01 : f32
    %153 = vector.broadcast %cst_63 : f32 to vector<8x128xf32>
    %154 = arith.addf %152, %153 : vector<8x128xf32>
    %155 = math.tanh %138 : vector<8x128xf32>
    %156 = arith.mulf %154, %155 : vector<8x128xf32>
    %157 = arith.addf %147, %156 : vector<8x128xf32>
    %158 = math.tanh %157 : vector<8x128xf32>
    %cst_64 = arith.constant 5.000000e-01 : f32
    %159 = vector.broadcast %cst_64 : f32 to vector<8x128xf32>
    %160 = arith.mulf %159, %139 : vector<8x128xf32>
    %161 = math.tanh %160 : vector<8x128xf32>
    %cst_65 = arith.constant 5.000000e-01 : f32
    %162 = vector.broadcast %cst_65 : f32 to vector<8x128xf32>
    %163 = arith.mulf %162, %161 : vector<8x128xf32>
    %cst_66 = arith.constant 5.000000e-01 : f32
    %164 = vector.broadcast %cst_66 : f32 to vector<8x128xf32>
    %165 = arith.addf %163, %164 : vector<8x128xf32>
    %166 = arith.mulf %158, %165 : vector<8x128xf32>
    %c0_67 = arith.constant 0 : index
    %c3 = arith.constant 3 : index
    %c0_68 = arith.constant 0 : index
    %c0_69 = arith.constant 0 : index
    %167 = vector.load %arg8[%c0_67, %c3, %c0_68, %c0_69] : memref<1x8x8x128xf32, #tpu.memory_space<vmem>>, vector<1x1x8x128xf32>
    %168 = vector.shape_cast %167 : vector<1x1x8x128xf32> to vector<8x128xf32>
    %169 = vector.shape_cast %166 : vector<8x128xf32> to vector<1x1x8x128xf32>
    tpu.vector_store %arg8[%c0_67, %c3, %c0_68, %c0_69], %169 {strides = array<i32>} : memref<1x8x8x128xf32, #tpu.memory_space<vmem>>, vector<1x1x8x128xf32>,
    %170 = vector.extract_strided_slice %13 {offsets = [32, 0], sizes = [8, 512], strides = [1, 1]} : vector<64x512xf32> to vector<8x512xf32>
    %171 = arith.truncf %166 : vector<8x128xf32> to vector<8x128xbf16>
    %cst_70 = arith.constant dense<0.000000e+00> : vector<8x512xf32>
    %172 = tpu.matmul %171, %15, %cst_70 {dimension_numbers = #tpu.dot_dimension_numbers<[1], [0], [0], [1], [0, 0, 1, 1], [], []>} : vector<8x128xbf16>, vector<128x512xbf16>, vector<8x512xf32> -> vector<8x512xf32>
    %173 = arith.addf %170, %172 : vector<8x512xf32>
    %174 = vector.extract_strided_slice %173 {offsets = [0, 0], sizes = [8, 128], strides = [1, 1]} : vector<8x512xf32> to vector<8x128xf32>
    %175 = vector.extract_strided_slice %173 {offsets = [0, 128], sizes = [8, 128], strides = [1, 1]} : vector<8x512xf32> to vector<8x128xf32>
    %176 = vector.extract_strided_slice %173 {offsets = [0, 256], sizes = [8, 128], strides = [1, 1]} : vector<8x512xf32> to vector<8x128xf32>
    %177 = vector.extract_strided_slice %173 {offsets = [0, 384], sizes = [8, 128], strides = [1, 1]} : vector<8x512xf32> to vector<8x128xf32>
    %cst_71 = arith.constant 5.000000e-01 : f32
    %178 = vector.broadcast %cst_71 : f32 to vector<8x128xf32>
    %179 = arith.mulf %178, %175 : vector<8x128xf32>
    %180 = math.tanh %179 : vector<8x128xf32>
    %cst_72 = arith.constant 5.000000e-01 : f32
    %181 = vector.broadcast %cst_72 : f32 to vector<8x128xf32>
    %182 = arith.mulf %181, %180 : vector<8x128xf32>
    %cst_73 = arith.constant 5.000000e-01 : f32
    %183 = vector.broadcast %cst_73 : f32 to vector<8x128xf32>
    %184 = arith.addf %182, %183 : vector<8x128xf32>
    %185 = arith.mulf %184, %157 : vector<8x128xf32>
    %cst_74 = arith.constant 5.000000e-01 : f32
    %186 = vector.broadcast %cst_74 : f32 to vector<8x128xf32>
    %187 = arith.mulf %186, %174 : vector<8x128xf32>
    %188 = math.tanh %187 : vector<8x128xf32>
    %cst_75 = arith.constant 5.000000e-01 : f32
    %189 = vector.broadcast %cst_75 : f32 to vector<8x128xf32>
    %190 = arith.mulf %189, %188 : vector<8x128xf32>
    %cst_76 = arith.constant 5.000000e-01 : f32
    %191 = vector.broadcast %cst_76 : f32 to vector<8x128xf32>
    %192 = arith.addf %190, %191 : vector<8x128xf32>
    %193 = math.tanh %176 : vector<8x128xf32>
    %194 = arith.mulf %192, %193 : vector<8x128xf32>
    %195 = arith.addf %185, %194 : vector<8x128xf32>
    %196 = math.tanh %195 : vector<8x128xf32>
    %cst_77 = arith.constant 5.000000e-01 : f32
    %197 = vector.broadcast %cst_77 : f32 to vector<8x128xf32>
    %198 = arith.mulf %197, %177 : vector<8x128xf32>
    %199 = math.tanh %198 : vector<8x128xf32>
    %cst_78 = arith.constant 5.000000e-01 : f32
    %200 = vector.broadcast %cst_78 : f32 to vector<8x128xf32>
    %201 = arith.mulf %200, %199 : vector<8x128xf32>
    %cst_79 = arith.constant 5.000000e-01 : f32
    %202 = vector.broadcast %cst_79 : f32 to vector<8x128xf32>
    %203 = arith.addf %201, %202 : vector<8x128xf32>
    %204 = arith.mulf %196, %203 : vector<8x128xf32>
    %c0_80 = arith.constant 0 : index
    %c4 = arith.constant 4 : index
    %c0_81 = arith.constant 0 : index
    %c0_82 = arith.constant 0 : index
    %205 = vector.load %arg8[%c0_80, %c4, %c0_81, %c0_82] : memref<1x8x8x128xf32, #tpu.memory_space<vmem>>, vector<1x1x8x128xf32>
    %206 = vector.shape_cast %205 : vector<1x1x8x128xf32> to vector<8x128xf32>
    %207 = vector.shape_cast %204 : vector<8x128xf32> to vector<1x1x8x128xf32>
    tpu.vector_store %arg8[%c0_80, %c4, %c0_81, %c0_82], %207 {strides = array<i32>} : memref<1x8x8x128xf32, #tpu.memory_space<vmem>>, vector<1x1x8x128xf32>,
    %208 = vector.extract_strided_slice %13 {offsets = [40, 0], sizes = [8, 512], strides = [1, 1]} : vector<64x512xf32> to vector<8x512xf32>
    %209 = arith.truncf %204 : vector<8x128xf32> to vector<8x128xbf16>
    %cst_83 = arith.constant dense<0.000000e+00> : vector<8x512xf32>
    %210 = tpu.matmul %209, %15, %cst_83 {dimension_numbers = #tpu.dot_dimension_numbers<[1], [0], [0], [1], [0, 0, 1, 1], [], []>} : vector<8x128xbf16>, vector<128x512xbf16>, vector<8x512xf32> -> vector<8x512xf32>
    %211 = arith.addf %208, %210 : vector<8x512xf32>
    %212 = vector.extract_strided_slice %211 {offsets = [0, 0], sizes = [8, 128], strides = [1, 1]} : vector<8x512xf32> to vector<8x128xf32>
    %213 = vector.extract_strided_slice %211 {offsets = [0, 128], sizes = [8, 128], strides = [1, 1]} : vector<8x512xf32> to vector<8x128xf32>
    %214 = vector.extract_strided_slice %211 {offsets = [0, 256], sizes = [8, 128], strides = [1, 1]} : vector<8x512xf32> to vector<8x128xf32>
    %215 = vector.extract_strided_slice %211 {offsets = [0, 384], sizes = [8, 128], strides = [1, 1]} : vector<8x512xf32> to vector<8x128xf32>
    %cst_84 = arith.constant 5.000000e-01 : f32
    %216 = vector.broadcast %cst_84 : f32 to vector<8x128xf32>
    %217 = arith.mulf %216, %213 : vector<8x128xf32>
    %218 = math.tanh %217 : vector<8x128xf32>
    %cst_85 = arith.constant 5.000000e-01 : f32
    %219 = vector.broadcast %cst_85 : f32 to vector<8x128xf32>
    %220 = arith.mulf %219, %218 : vector<8x128xf32>
    %cst_86 = arith.constant 5.000000e-01 : f32
    %221 = vector.broadcast %cst_86 : f32 to vector<8x128xf32>
    %222 = arith.addf %220, %221 : vector<8x128xf32>
    %223 = arith.mulf %222, %195 : vector<8x128xf32>
    %cst_87 = arith.constant 5.000000e-01 : f32
    %224 = vector.broadcast %cst_87 : f32 to vector<8x128xf32>
    %225 = arith.mulf %224, %212 : vector<8x128xf32>
    %226 = math.tanh %225 : vector<8x128xf32>
    %cst_88 = arith.constant 5.000000e-01 : f32
    %227 = vector.broadcast %cst_88 : f32 to vector<8x128xf32>
    %228 = arith.mulf %227, %226 : vector<8x128xf32>
    %cst_89 = arith.constant 5.000000e-01 : f32
    %229 = vector.broadcast %cst_89 : f32 to vector<8x128xf32>
    %230 = arith.addf %228, %229 : vector<8x128xf32>
    %231 = math.tanh %214 : vector<8x128xf32>
    %232 = arith.mulf %230, %231 : vector<8x128xf32>
    %233 = arith.addf %223, %232 : vector<8x128xf32>
    %234 = math.tanh %233 : vector<8x128xf32>
    %cst_90 = arith.constant 5.000000e-01 : f32
    %235 = vector.broadcast %cst_90 : f32 to vector<8x128xf32>
    %236 = arith.mulf %235, %215 : vector<8x128xf32>
    %237 = math.tanh %236 : vector<8x128xf32>
    %cst_91 = arith.constant 5.000000e-01 : f32
    %238 = vector.broadcast %cst_91 : f32 to vector<8x128xf32>
    %239 = arith.mulf %238, %237 : vector<8x128xf32>
    %cst_92 = arith.constant 5.000000e-01 : f32
    %240 = vector.broadcast %cst_92 : f32 to vector<8x128xf32>
    %241 = arith.addf %239, %240 : vector<8x128xf32>
    %242 = arith.mulf %234, %241 : vector<8x128xf32>
    %c0_93 = arith.constant 0 : index
    %c5 = arith.constant 5 : index
    %c0_94 = arith.constant 0 : index
    %c0_95 = arith.constant 0 : index
    %243 = vector.load %arg8[%c0_93, %c5, %c0_94, %c0_95] : memref<1x8x8x128xf32, #tpu.memory_space<vmem>>, vector<1x1x8x128xf32>
    %244 = vector.shape_cast %243 : vector<1x1x8x128xf32> to vector<8x128xf32>
    %245 = vector.shape_cast %242 : vector<8x128xf32> to vector<1x1x8x128xf32>
    tpu.vector_store %arg8[%c0_93, %c5, %c0_94, %c0_95], %245 {strides = array<i32>} : memref<1x8x8x128xf32, #tpu.memory_space<vmem>>, vector<1x1x8x128xf32>,
    %246 = vector.extract_strided_slice %13 {offsets = [48, 0], sizes = [8, 512], strides = [1, 1]} : vector<64x512xf32> to vector<8x512xf32>
    %247 = arith.truncf %242 : vector<8x128xf32> to vector<8x128xbf16>
    %cst_96 = arith.constant dense<0.000000e+00> : vector<8x512xf32>
    %248 = tpu.matmul %247, %15, %cst_96 {dimension_numbers = #tpu.dot_dimension_numbers<[1], [0], [0], [1], [0, 0, 1, 1], [], []>} : vector<8x128xbf16>, vector<128x512xbf16>, vector<8x512xf32> -> vector<8x512xf32>
    %249 = arith.addf %246, %248 : vector<8x512xf32>
    %250 = vector.extract_strided_slice %249 {offsets = [0, 0], sizes = [8, 128], strides = [1, 1]} : vector<8x512xf32> to vector<8x128xf32>
    %251 = vector.extract_strided_slice %249 {offsets = [0, 128], sizes = [8, 128], strides = [1, 1]} : vector<8x512xf32> to vector<8x128xf32>
    %252 = vector.extract_strided_slice %249 {offsets = [0, 256], sizes = [8, 128], strides = [1, 1]} : vector<8x512xf32> to vector<8x128xf32>
    %253 = vector.extract_strided_slice %249 {offsets = [0, 384], sizes = [8, 128], strides = [1, 1]} : vector<8x512xf32> to vector<8x128xf32>
    %cst_97 = arith.constant 5.000000e-01 : f32
    %254 = vector.broadcast %cst_97 : f32 to vector<8x128xf32>
    %255 = arith.mulf %254, %251 : vector<8x128xf32>
    %256 = math.tanh %255 : vector<8x128xf32>
    %cst_98 = arith.constant 5.000000e-01 : f32
    %257 = vector.broadcast %cst_98 : f32 to vector<8x128xf32>
    %258 = arith.mulf %257, %256 : vector<8x128xf32>
    %cst_99 = arith.constant 5.000000e-01 : f32
    %259 = vector.broadcast %cst_99 : f32 to vector<8x128xf32>
    %260 = arith.addf %258, %259 : vector<8x128xf32>
    %261 = arith.mulf %260, %233 : vector<8x128xf32>
    %cst_100 = arith.constant 5.000000e-01 : f32
    %262 = vector.broadcast %cst_100 : f32 to vector<8x128xf32>
    %263 = arith.mulf %262, %250 : vector<8x128xf32>
    %264 = math.tanh %263 : vector<8x128xf32>
    %cst_101 = arith.constant 5.000000e-01 : f32
    %265 = vector.broadcast %cst_101 : f32 to vector<8x128xf32>
    %266 = arith.mulf %265, %264 : vector<8x128xf32>
    %cst_102 = arith.constant 5.000000e-01 : f32
    %267 = vector.broadcast %cst_102 : f32 to vector<8x128xf32>
    %268 = arith.addf %266, %267 : vector<8x128xf32>
    %269 = math.tanh %252 : vector<8x128xf32>
    %270 = arith.mulf %268, %269 : vector<8x128xf32>
    %271 = arith.addf %261, %270 : vector<8x128xf32>
    %272 = math.tanh %271 : vector<8x128xf32>
    %cst_103 = arith.constant 5.000000e-01 : f32
    %273 = vector.broadcast %cst_103 : f32 to vector<8x128xf32>
    %274 = arith.mulf %273, %253 : vector<8x128xf32>
    %275 = math.tanh %274 : vector<8x128xf32>
    %cst_104 = arith.constant 5.000000e-01 : f32
    %276 = vector.broadcast %cst_104 : f32 to vector<8x128xf32>
    %277 = arith.mulf %276, %275 : vector<8x128xf32>
    %cst_105 = arith.constant 5.000000e-01 : f32
    %278 = vector.broadcast %cst_105 : f32 to vector<8x128xf32>
    %279 = arith.addf %277, %278 : vector<8x128xf32>
    %280 = arith.mulf %272, %279 : vector<8x128xf32>
    %c0_106 = arith.constant 0 : index
    %c6 = arith.constant 6 : index
    %c0_107 = arith.constant 0 : index
    %c0_108 = arith.constant 0 : index
    %281 = vector.load %arg8[%c0_106, %c6, %c0_107, %c0_108] : memref<1x8x8x128xf32, #tpu.memory_space<vmem>>, vector<1x1x8x128xf32>
    %282 = vector.shape_cast %281 : vector<1x1x8x128xf32> to vector<8x128xf32>
    %283 = vector.shape_cast %280 : vector<8x128xf32> to vector<1x1x8x128xf32>
    tpu.vector_store %arg8[%c0_106, %c6, %c0_107, %c0_108], %283 {strides = array<i32>} : memref<1x8x8x128xf32, #tpu.memory_space<vmem>>, vector<1x1x8x128xf32>,
    %284 = vector.extract_strided_slice %13 {offsets = [56, 0], sizes = [8, 512], strides = [1, 1]} : vector<64x512xf32> to vector<8x512xf32>
    %285 = arith.truncf %280 : vector<8x128xf32> to vector<8x128xbf16>
    %cst_109 = arith.constant dense<0.000000e+00> : vector<8x512xf32>
    %286 = tpu.matmul %285, %15, %cst_109 {dimension_numbers = #tpu.dot_dimension_numbers<[1], [0], [0], [1], [0, 0, 1, 1], [], []>} : vector<8x128xbf16>, vector<128x512xbf16>, vector<8x512xf32> -> vector<8x512xf32>
    %287 = arith.addf %284, %286 : vector<8x512xf32>
    %288 = vector.extract_strided_slice %287 {offsets = [0, 0], sizes = [8, 128], strides = [1, 1]} : vector<8x512xf32> to vector<8x128xf32>
    %289 = vector.extract_strided_slice %287 {offsets = [0, 128], sizes = [8, 128], strides = [1, 1]} : vector<8x512xf32> to vector<8x128xf32>
    %290 = vector.extract_strided_slice %287 {offsets = [0, 256], sizes = [8, 128], strides = [1, 1]} : vector<8x512xf32> to vector<8x128xf32>
    %291 = vector.extract_strided_slice %287 {offsets = [0, 384], sizes = [8, 128], strides = [1, 1]} : vector<8x512xf32> to vector<8x128xf32>
    %cst_110 = arith.constant 5.000000e-01 : f32
    %292 = vector.broadcast %cst_110 : f32 to vector<8x128xf32>
    %293 = arith.mulf %292, %289 : vector<8x128xf32>
    %294 = math.tanh %293 : vector<8x128xf32>
    %cst_111 = arith.constant 5.000000e-01 : f32
    %295 = vector.broadcast %cst_111 : f32 to vector<8x128xf32>
    %296 = arith.mulf %295, %294 : vector<8x128xf32>
    %cst_112 = arith.constant 5.000000e-01 : f32
    %297 = vector.broadcast %cst_112 : f32 to vector<8x128xf32>
    %298 = arith.addf %296, %297 : vector<8x128xf32>
    %299 = arith.mulf %298, %271 : vector<8x128xf32>
    %cst_113 = arith.constant 5.000000e-01 : f32
    %300 = vector.broadcast %cst_113 : f32 to vector<8x128xf32>
    %301 = arith.mulf %300, %288 : vector<8x128xf32>
    %302 = math.tanh %301 : vector<8x128xf32>
    %cst_114 = arith.constant 5.000000e-01 : f32
    %303 = vector.broadcast %cst_114 : f32 to vector<8x128xf32>
    %304 = arith.mulf %303, %302 : vector<8x128xf32>
    %cst_115 = arith.constant 5.000000e-01 : f32
    %305 = vector.broadcast %cst_115 : f32 to vector<8x128xf32>
    %306 = arith.addf %304, %305 : vector<8x128xf32>
    %307 = math.tanh %290 : vector<8x128xf32>
    %308 = arith.mulf %306, %307 : vector<8x128xf32>
    %309 = arith.addf %299, %308 : vector<8x128xf32>
    %310 = math.tanh %309 : vector<8x128xf32>
    %cst_116 = arith.constant 5.000000e-01 : f32
    %311 = vector.broadcast %cst_116 : f32 to vector<8x128xf32>
    %312 = arith.mulf %311, %291 : vector<8x128xf32>
    %313 = math.tanh %312 : vector<8x128xf32>
    %cst_117 = arith.constant 5.000000e-01 : f32
    %314 = vector.broadcast %cst_117 : f32 to vector<8x128xf32>
    %315 = arith.mulf %314, %313 : vector<8x128xf32>
    %cst_118 = arith.constant 5.000000e-01 : f32
    %316 = vector.broadcast %cst_118 : f32 to vector<8x128xf32>
    %317 = arith.addf %315, %316 : vector<8x128xf32>
    %318 = arith.mulf %310, %317 : vector<8x128xf32>
    %c0_119 = arith.constant 0 : index
    %c7 = arith.constant 7 : index
    %c0_120 = arith.constant 0 : index
    %c0_121 = arith.constant 0 : index
    %319 = vector.load %arg8[%c0_119, %c7, %c0_120, %c0_121] : memref<1x8x8x128xf32, #tpu.memory_space<vmem>>, vector<1x1x8x128xf32>
    %320 = vector.shape_cast %319 : vector<1x1x8x128xf32> to vector<8x128xf32>
    %321 = vector.shape_cast %318 : vector<8x128xf32> to vector<1x1x8x128xf32>
    tpu.vector_store %arg8[%c0_119, %c7, %c0_120, %c0_121], %321 {strides = array<i32>} : memref<1x8x8x128xf32, #tpu.memory_space<vmem>>, vector<1x1x8x128xf32>,
    %c0_122 = arith.constant 0 : index
    %c0_123 = arith.constant 0 : index
    %322 = vector.load %arg9[%c0_122, %c0_123] : memref<8x128xf32, #tpu.memory_space<vmem>>, vector<8x128xf32>
    tpu.vector_store %arg9[%c0_122, %c0_123], %318 {strides = array<i32>} : memref<8x128xf32, #tpu.memory_space<vmem>>, vector<8x128xf32>,
    %c0_124 = arith.constant 0 : index
    %c0_125 = arith.constant 0 : index
    %323 = vector.load %arg10[%c0_124, %c0_125] : memref<8x128xf32, #tpu.memory_space<vmem>>, vector<8x128xf32>
    tpu.vector_store %arg10[%c0_124, %c0_125], %309 {strides = array<i32>} : memref<8x128xf32, #tpu.memory_space<vmem>>, vector<8x128xf32>,
    return
  }
  func.func @transform_0(%arg0: i32, %arg1: i32) -> (i32, i32, i32, i32) {
    %c0_i32 = arith.constant 0 : i32
    %c0_i32_0 = arith.constant 0 : i32
    %c0_i32_1 = arith.constant 0 : i32
    return %arg0, %arg1, %c0_i32, %c0_i32_0 : i32, i32, i32, i32
  }
  func.func @transform_1(%arg0: i32, %arg1: i32) -> (i32, i32, i32) {
    %c0_i32 = arith.constant 0 : i32
    %c0_i32_0 = arith.constant 0 : i32
    %c0_i32_1 = arith.constant 0 : i32
    return %arg0, %c0_i32, %c0_i32_0 : i32, i32, i32
  }
  func.func @transform_2(%arg0: i32, %arg1: i32) -> (i32, i32, i32) {
    %c0_i32 = arith.constant 0 : i32
    %c0_i32_0 = arith.constant 0 : i32
    %c0_i32_1 = arith.constant 0 : i32
    return %arg0, %c0_i32, %c0_i32_0 : i32, i32, i32
  }
  func.func @transform_3(%arg0: i32, %arg1: i32) -> (i32, i32, i32) {
    %c0_i32 = arith.constant 0 : i32
    %c0_i32_0 = arith.constant 0 : i32
    %c0_i32_1 = arith.constant 0 : i32
    return %arg0, %c0_i32, %c0_i32_0 : i32, i32, i32
  }
  func.func @transform_4(%arg0: i32, %arg1: i32) -> (i32, i32, i32) {
    %c0_i32 = arith.constant 0 : i32
    %c0_i32_0 = arith.constant 0 : i32
    %c0_i32_1 = arith.constant 0 : i32
    return %arg0, %c0_i32, %c0_i32_0 : i32, i32, i32
  }
  func.func @transform_5(%arg0: i32, %arg1: i32) -> (i32, i32, i32) {
    %c0_i32 = arith.constant 0 : i32
    %c0_i32_0 = arith.constant 0 : i32
    %c0_i32_1 = arith.constant 0 : i32
    return %arg0, %c0_i32, %c0_i32_0 : i32, i32, i32
  }
  func.func @transform_6(%arg0: i32, %arg1: i32) -> (i32, i32, i32, i32) {
    %c0_i32 = arith.constant 0 : i32
    %c0_i32_0 = arith.constant 0 : i32
    %c0_i32_1 = arith.constant 0 : i32
    return %arg0, %arg1, %c0_i32, %c0_i32_0 : i32, i32, i32, i32
  }
}

</mosaic_0001>

<bundles_post_ra>
// kernel: lstm_forward.1
= control target key start
LH: loop header
LB: loop body
LE: loop exit
PB: predicated region body
PF: predicated region fallthrough
CT: control target
= control target key end

     0   :  { %s2419_s21 = smov 0   ;;  %s2421_s22 = smov 0   ;;  %s3106_s0 = inlined_call_operand.vmem [shape: f32[2,16,8,128], index: 0, kind: input, shape index: {}]   ;;  %s3107_s1 = inlined_call_operand.vmem [shape: bf16[2,128,512], index: 1, kind: input, shape index: {}]   ;;  %s3108_s2 = inlined_call_operand.vmem [shape: f32[2,1,512], index: 2, kind: input, shape index: {}]   ;;  %s3109_s3 = inlined_call_operand.vmem [shape: bf16[2,128,512], index: 3, kind: input, shape index: {}]   ;;  %s3110_s4 = inlined_call_operand.vmem [shape: f32[2,8,128], index: 4, kind: input, shape index: {}, may-alias: {4,5}]   ;;  %s3111_s5 = inlined_call_operand.vmem [shape: f32[2,8,128], index: 5, kind: input, shape index: {}, may-alias: {4,5}]   ;;  %s3112_s6 = inlined_call_operand.vmem [shape: f32[2,16,8,128], index: 6, kind: output, shape index: {}]  }
   0x1   :  { %3115 = sst [smem:[#allocation26_spill]] %s3106_s0  ;;  %s2423_s23 = smov 0  }
   0x2   :  { %3116 = sst [smem:[#allocation27_spill]] %s3107_s1  ;;  %s2425_s24 = smov 0  }
   0x3   :  { %s2427_s25 = smov 0  }
   0x4 LB: > { %s25_s26 = sadd.s32 1, %s2373_s23  ;;  %s28_s27 = sadd.s32 1, %s2377_s24  ;;  %s2381_s25 = sphi %s2427_s25, %s16_s25   ;;  %s2377_s24 = sphi %s2425_s24, %s3167_s24   ;;  %s2373_s23 = sphi %s2423_s23, %s3166_s23   ;;  %s2369_s22 = sphi %s2421_s22, %s3165_s22   ;;  %s2365_s21 = sphi %s2419_s21, %s3164_s21  }
   0x5   : > { %p26_p0 = scmp.ge.s32.totalorder %s25_s26, 2  ;;  %p1996_p1 = scmp.ge.s32.totalorder %s2381_s25, 1 }
   0x6   : > { %p280_p2 = scmp.lt.s32.totalorder %s2381_s25, 5 }
   0x7   : > { %s3169_s26 = smov (%p26_p0, %s25_s26), 0  ;;  %s3171_s27 = smov (!%p26_p0, %s28_s27), %s2377_s24 }
   0x8   : > { %p281_p3 = pnand %p1996_p1, %p280_p2  ;;  %p30_p4 = scmp.ge.s32.totalorder %s3171_s27, 2 }
   0xa   : > { %s3173_s27 = smov (%p30_p4, %s3171_s27), 0  ;;  %284 = sbr.rel (%p281_p3) target bundleno = 2109 (0x83d), region = 44 }
   0xb   : > { %3117 = sst [smem:[#allocation4_spill]] %s3173_s27 }
  0x11   : > { %s1997_s28 = sshll.u32 %s2365_s21, 3  ;;  %p341_p5 = scmp.lt.s32.totalorder %s2369_s22, 1 }
  0x12   : > { %p343_p6 = scmp.lt.s32.totalorder %s1997_s28, 15  ;;  %s3118_s1 = sld [smem:[#allocation27_spill]] }
  0x13   : > { %s3175_s22 = smov (!%p341_p5, %s2369_s22), 1  ;;  %s3119_s0 = sld [smem:[#allocation26_spill]] }
  0x14   : > { %s3177_s28 = smov (!%p343_p6, %s1997_s28), 15  ;;  %s1998_s29 = sshll.u32 %s3175_s22, 4 }
  0x15   : > { %s2088_s30 = sshll.u32 %s3175_s22, 8  ;;  %s346_s7 = sadd.s32 %s1998_s29, %s3177_s28 }
  0x16   : > { %s1999_s11 = sshll.u32 %s346_s7, 3  ;;  %s2002_s12 = sshll.u32 %s3175_s22, 2 }
  0x17   : > { %s2465_s18 = scalar_lea.vmem %s3108_s2, %s2002_s12  ;;  %s2470_s28 = scalar_lea.vmem %s3109_s3, %s2088_s30 }
  0x18   : > { %s2455_s10 = scalar_lea.vmem %s3118_s1, %s2088_s30  ;;  %s2005_s29 = sshll.u32 %s3175_s22, 3 }
  0x19   : > { %s2460_s15 = scalar_lea.vmem %s3119_s0, %s1999_s11  ;;  %s367_s7 = scalar_lea.vmem %s3110_s4, %s2005_s29 }
  0x1a   : > { %s371_s13 = scalar_lea.vmem %s3111_s5, %s2005_s29  ;;  %s2481_s16 = scalar_lea.vmem %s3112_s6, %s1999_s11 }
  0x1b   : > { %p2010_p7 = scmp.ne.s32.totalorder %s2365_s21, 0 }
  0x1c   : > { %v387_v0 = vld [vmem:[%s367_s7] sm:$0xff] (!%p2010_p7) }
  0x1d   : > { %386 = sbr.rel (%p2010_p7) target bundleno = 36 (0x24), region = 48  ;;  %v389_v1 = vld [vmem:[%s371_s13] sm:$0xff] (!%p2010_p7)  ;;  %388 = vst [vmem:[#allocation2] sm:$0xff] (!%p2010_p7), %v387_v0 }
  0x1e   : > { %390 = vst [vmem:[#allocation3] sm:$0xff] (!%p2010_p7), %v389_v1 }
  0x24 PF: > { %v2135_v2 = vld [vmem:[%s2455_s10 + $0x4] ss:$16 sps:$4 sm:$0xff]   ;;  %v2137_v3 = vld [vmem:[%s2455_s10 + $0xc] ss:$16 sps:$4 sm:$0xff]   ;;  %v3113_v4 = vmov 0  }
  0x25   : > { %677 = vmatprep.mubr.bf16.mxu0 %v3113_v4  ;;  %750 = vmatprep.mubr.bf16.mxu1 %v3113_v4  ;;  %v2139_v5 = vld [vmem:[%s2455_s10] ss:$16 sps:$4 sm:$0xff]   ;;  %v2140_v6 = vld [vmem:[%s2455_s10 + $0x8] ss:$16 sps:$4 sm:$0xff]   ;;  %v2141_v7 = vld [vmem:[%s2455_s10 + $0x24] ss:$16 sps:$4 sm:$0xff]  }
  0x26   : > { %645 = vmatprep.subr.bf16.mxu0 %v2135_v2  ;;  %718 = vmatprep.subr.bf16.mxu1 %v2137_v3  ;;  %v2143_v8 = vld [vmem:[%s2455_s10 + $0x2c] ss:$16 sps:$4 sm:$0xff]   ;;  %v2145_v9 = vld [vmem:[%s2455_s10 + $0x20] ss:$16 sps:$4 sm:$0xff]   ;;  %v2146_v10 = vld [vmem:[%s2455_s10 + $0x28] ss:$16 sps:$4 sm:$0xff]  }
  0x27   : > { %646 = vmatpush1.bf16.msra.mxu0 %v2139_v5  ;;  %719 = vmatpush1.bf16.msra.mxu1 %v2140_v6  ;;  %v2147_v11 = vld [vmem:[%s2455_s10 + $0x44] ss:$16 sps:$4 sm:$0xff]   ;;  %v2149_v12 = vld [vmem:[%s2455_s10 + $0x4c] ss:$16 sps:$4 sm:$0xff]   ;;  %v2151_v13 = vld [vmem:[%s2455_s10 + $0x40] ss:$16 sps:$4 sm:$0xff]  }
  0x28   : > { %647 = vmatprep.subr.bf16.mxu0 %v2141_v7  ;;  %720 = vmatprep.subr.bf16.mxu1 %v2143_v8  ;;  %v2152_v14 = vld [vmem:[%s2455_s10 + $0x48] ss:$16 sps:$4 sm:$0xff]   ;;  %v2153_v15 = vld [vmem:[%s2455_s10 + $0x64] ss:$16 sps:$4 sm:$0xff]   ;;  %v2155_v16 = vld [vmem:[%s2455_s10 + $0x6c] ss:$16 sps:$4 sm:$0xff]  }
  0x29   : > { %v2157_v17 = vld [vmem:[%s2455_s10 + $0x60] ss:$16 sps:$4 sm:$0xff]   ;;  %v2158_v18 = vld [vmem:[%s2455_s10 + $0x68] ss:$16 sps:$4 sm:$0xff]   ;;  %v2159_v19 = vld [vmem:[%s2455_s10 + $0x84] ss:$16 sps:$4 sm:$0xff]  }
  0x2a   : > { %v2161_v20 = vld [vmem:[%s2455_s10 + $0x8c] ss:$16 sps:$4 sm:$0xff]   ;;  %v2163_v21 = vld [vmem:[%s2455_s10 + $0x80] ss:$16 sps:$4 sm:$0xff]   ;;  %v2164_v22 = vld [vmem:[%s2455_s10 + $0x88] ss:$16 sps:$4 sm:$0xff]  }
  0x2b   : > { %648 = vmatpush1.bf16.msra.mxu0 %v2145_v9  ;;  %721 = vmatpush1.bf16.msra.mxu1 %v2146_v10  ;;  %v2165_v23 = vld [vmem:[%s2455_s10 + $0xa4] ss:$16 sps:$4 sm:$0xff]   ;;  %v2167_v24 = vld [vmem:[%s2455_s10 + $0xac] ss:$16 sps:$4 sm:$0xff]   ;;  %v2169_v25 = vld [vmem:[%s2455_s10 + $0xa0] ss:$16 sps:$4 sm:$0xff]  }
  0x2c   : > { %649 = vmatprep.subr.bf16.mxu0 %v2147_v11  ;;  %722 = vmatprep.subr.bf16.mxu1 %v2149_v12  ;;  %v2170_v26 = vld [vmem:[%s2455_s10 + $0xa8] ss:$16 sps:$4 sm:$0xff]   ;;  %v2171_v27 = vld [vmem:[%s2455_s10 + $0xc4] ss:$16 sps:$4 sm:$0xff]   ;;  %v2173_v28 = vld [vmem:[%s2455_s10 + $0xcc] ss:$16 sps:$4 sm:$0xff]  }
  0x2d   : > { %v2175_v29 = vld [vmem:[%s2455_s10 + $0xc0] ss:$16 sps:$4 sm:$0xff]   ;;  %v2176_v30 = vld [vmem:[%s2455_s10 + $0xc8] ss:$16 sps:$4 sm:$0xff]   ;;  %v2177_v31 = vld [vmem:[%s2455_s10 + $0xe4] ss:$16 sps:$4 sm:$0xff]  }
  0x2e   : > { %v2179_v32 = vld [vmem:[%s2455_s10 + $0xec] ss:$16 sps:$4 sm:$0xff]   ;;  %v2181_v33 = vld [vmem:[%s2455_s10 + $0xe0] ss:$16 sps:$4 sm:$0xff]   ;;  %v2182_v34 = vld [vmem:[%s2455_s10 + $0xe8] ss:$16 sps:$4 sm:$0xff]  }
  0x2f   : > { %650 = vmatpush1.bf16.msra.mxu0 %v2151_v13  ;;  %723 = vmatpush1.bf16.msra.mxu1 %v2152_v14  ;;  %v391_v35 = vld [vmem:[%s2460_s15] sm:$0xff]  ;;  %v392_v36 = vld [vmem:[%s2460_s15 + $0x8] sm:$0xff]  ;;  %v393_v46 = vld [vmem:[%s2460_s15 + $0x10] sm:$0xff] }
  0x30   : > { %651 = vmatprep.subr.bf16.mxu0 %v2153_v15  ;;  %724 = vmatprep.subr.bf16.mxu1 %v2155_v16  ;;  %v2521_v37 = vld [vmem:[%s2470_s28 + $0x4] ss:$16 sps:$4 sm:$0xff]   ;;  %v2524_v38 = vld [vmem:[%s2470_s28 + $0xc] ss:$16 sps:$4 sm:$0xff]   ;;  %v2090_v39 = vpack.c.bf16 %v392_v36, %v391_v35  ;;  %v2527_v40 = vld [vmem:[%s2470_s28] ss:$16 sps:$4 sm:$0xff]  }
  0x31   : > { %v2530_v41 = vld [vmem:[%s2470_s28 + $0x8] ss:$16 sps:$4 sm:$0xff]   ;;  %v2535_v42 = vld [vmem:[%s2470_s28 + $0x24] ss:$16 sps:$4 sm:$0xff]   ;;  %v2538_v43 = vld [vmem:[%s2470_s28 + $0x2c] ss:$16 sps:$4 sm:$0xff]  }
  0x32   : > { %v2541_v44 = vld [vmem:[%s2470_s28 + $0x20] ss:$16 sps:$4 sm:$0xff]   ;;  %v2544_v45 = vld [vmem:[%s2470_s28 + $0x28] ss:$16 sps:$4 sm:$0xff]   ;;  %v2551_v48 = vld [vmem:[%s2470_s28 + $0x44] ss:$16 sps:$4 sm:$0xff]  }
  0x33   : > { %652 = vmatpush1.bf16.msra.mxu0 %v2157_v17  ;;  %725 = vmatpush1.bf16.msra.mxu1 %v2158_v18  ;;  %v394_v47 = vld [vmem:[%s2460_s15 + $0x18] sm:$0xff]  ;;  %v2561_v51 = vld [vmem:[%s2470_s28 + $0x40] ss:$16 sps:$4 sm:$0xff]   ;;  %v2569_v53 = vld [vmem:[%s2470_s28 + $0x64] ss:$16 sps:$4 sm:$0xff]   ;;  %v441_v18 = vlaneseq }
  0x34   : > { %653 = vmatprep.subr.bf16.mxu0 %v2159_v19  ;;  %726 = vmatprep.subr.bf16.mxu1 %v2161_v20  ;;  %v2556_v49 = vld [vmem:[%s2470_s28 + $0x4c] ss:$16 sps:$4 sm:$0xff]   ;;  %v2091_v50 = vpack.c.bf16 %v394_v47, %v393_v46  ;;  %v2564_v52 = vld [vmem:[%s2470_s28 + $0x48] ss:$16 sps:$4 sm:$0xff]   ;;  %v2577_v55 = vld [vmem:[%s2470_s28 + $0x60] ss:$16 sps:$4 sm:$0xff]  }
  0x35   : > { %v2574_v54 = vld [vmem:[%s2470_s28 + $0x6c] ss:$16 sps:$4 sm:$0xff]   ;;  %v2580_v56 = vld [vmem:[%s2470_s28 + $0x68] ss:$16 sps:$4 sm:$0xff]   ;;  %v395_v57 = vld [vmem:[%s2460_s15 + $0x20] sm:$0xff]  ;;  %v442_v19 = vshrl.u32 %v441_v18, 7 }
  0x36   : > { %v396_v58 = vld [vmem:[%s2460_s15 + $0x28] sm:$0xff]  ;;  %v2589_v59 = vld [vmem:[%s2470_s28 + $0x84] ss:$16 sps:$4 sm:$0xff]   ;;  %v2599_v62 = vld [vmem:[%s2470_s28 + $0x80] ss:$16 sps:$4 sm:$0xff]  }
  0x37   : > { %654 = vmatpush1.bf16.msra.mxu0 %v2163_v21  ;;  %727 = vmatpush1.bf16.msra.mxu1 %v2164_v22  ;;  %v2592_v60 = vld [vmem:[%s2470_s28 + $0x8c] ss:$16 sps:$4 sm:$0xff]   ;;  %v2092_v61 = vpack.c.bf16 %v396_v58, %v395_v57  ;;  %v2602_v63 = vld [vmem:[%s2470_s28 + $0x88] ss:$16 sps:$4 sm:$0xff]   ;;  %v2607_v0 = vld [vmem:[%s2470_s28 + $0xa4] ss:$16 sps:$4 sm:$0xff]  }
  0x38   : > { %655 = vmatprep.subr.bf16.mxu0 %v2165_v23  ;;  %728 = vmatprep.subr.bf16.mxu1 %v2167_v24  ;;  %v2610_v1 = vld [vmem:[%s2470_s28 + $0xac] ss:$16 sps:$4 sm:$0xff]   ;;  %v2613_v2 = vld [vmem:[%s2470_s28 + $0xa0] ss:$16 sps:$4 sm:$0xff]   ;;  %v2618_v3 = vld [vmem:[%s2470_s28 + $0xa8] ss:$16 sps:$4 sm:$0xff]  }
  0x39   : > { %v397_v5 = vld [vmem:[%s2460_s15 + $0x30] sm:$0xff]  ;;  %v398_v6 = vld [vmem:[%s2460_s15 + $0x38] sm:$0xff]  ;;  %v823_v16 = vld [vmem:[#allocation2] sm:$0xff]  ;;  %v451_v20 = vsub.s32 2, %v442_v19  ;;  %v455_v21 = vsub.s32 3, %v442_v19  ;;  %v443_v22 = vsub.s32 0, %v442_v19 }
  0x3a   : > { %v2625_v7 = vld [vmem:[%s2470_s28 + $0xc4] ss:$16 sps:$4 sm:$0xff]   ;;  %v2628_v8 = vld [vmem:[%s2470_s28 + $0xcc] ss:$16 sps:$4 sm:$0xff]   ;;  %v2093_v9 = vpack.c.bf16 %v398_v6, %v397_v5  ;;  %v2635_v10 = vld [vmem:[%s2470_s28 + $0xc0] ss:$16 sps:$4 sm:$0xff]   ;;  %v825_v17 = vpack.c.bf16 %v823_v16, %v823_v16 }
  0x3b   : > { %656 = vmatpush1.bf16.msra.mxu0 %v2169_v25  ;;  %729 = vmatpush1.bf16.msra.mxu1 %v2170_v26  ;;  %v2638_v11 = vld [vmem:[%s2470_s28 + $0xc8] ss:$16 sps:$4 sm:$0xff]   ;;  %v2643_v12 = vld [vmem:[%s2470_s28 + $0xe4] ss:$16 sps:$4 sm:$0xff]   ;;  %v2646_v13 = vld [vmem:[%s2470_s28 + $0xec] ss:$16 sps:$4 sm:$0xff]  }
  0x3c   : > { %657 = vmatprep.subr.bf16.mxu0 %v2171_v27  ;;  %730 = vmatprep.subr.bf16.mxu1 %v2173_v28  ;;  %v2651_v14 = vld [vmem:[%s2470_s28 + $0xe0] ss:$16 sps:$4 sm:$0xff]   ;;  %v2654_v15 = vld [vmem:[%s2470_s28 + $0xe8] ss:$16 sps:$4 sm:$0xff]   ;;  %v447_v24 = vsub.s32 1, %v442_v19 }
  0x3d   : > { %v439_v23 = vld [vmem:[%s2465_s18] sm:$0xf] }
  0x3e   : > { %v2699_v25 = vrot.slane %v439_v23, %v451_v20  ;;  %v2705_v28 = vrot.slane %v439_v23, %v455_v21 }
  0x3f   : > { %658 = vmatpush1.bf16.msra.mxu0 %v2175_v29  ;;  %731 = vmatpush1.bf16.msra.mxu1 %v2176_v30  ;;  %v444_v29 = vrot.slane %v439_v23, %v443_v22 }
  0x40   : > { %659 = vmatprep.subr.bf16.mxu0 %v2177_v31  ;;  %732 = vmatprep.subr.bf16.mxu1 %v2179_v32  ;;  %v448_v32 = vrot.slane %v439_v23, %v447_v24 }
  0x43   : > { %660 = vmatpush1.bf16.msra.mxu0 %v2181_v33  ;;  %733 = vmatpush1.bf16.msra.mxu1 %v2182_v34 }
  0x44   : > { %986 = vmatprep.subr.bf16.mxu0 %v2521_v37  ;;  %1027 = vmatprep.subr.bf16.mxu1 %v2524_v38 }
  0x46   : > { %678 = vmatmul.mubr.bf16.vlgmr.msra.gmra.mrb[0].mxu0 %v2090_v39  ;;  %751 = vmatmul.mubr.bf16.vlgmr.msra.gmra.mrb[0].mxu1 %v2090_v39 }
  0x47   : > { %987 = vmatpush1.bf16.msra.mxu0 %v2527_v40  ;;  %1028 = vmatpush1.bf16.msra.mxu1 %v2530_v41 }
  0x48   : > { %988 = vmatprep.subr.bf16.mxu0 %v2535_v42  ;;  %1029 = vmatprep.subr.bf16.mxu1 %v2538_v43 }
  0x49   : > { %687 = vmatprep.mubr.bf16.mxu0 %v3113_v4  ;;  %760 = vmatprep.mubr.bf16.mxu1 %v3113_v4 }
  0x4b   : > { %989 = vmatpush1.bf16.msra.mxu0 %v2541_v44  ;;  %1030 = vmatpush1.bf16.msra.mxu1 %v2544_v45 }
  0x4c   : > { %990 = vmatprep.subr.bf16.mxu0 %v2551_v48  ;;  %1031 = vmatprep.subr.bf16.mxu1 %v2556_v49 }
  0x4e   : > { %688 = vmatmul.mubr.bf16.gmra.mrb[4].mxu0 %v2091_v50  ;;  %761 = vmatmul.mubr.bf16.gmra.mrb[4].mxu1 %v2091_v50 }
  0x4f   : > { %991 = vmatpush1.bf16.msra.mxu0 %v2561_v51  ;;  %1032 = vmatpush1.bf16.msra.mxu1 %v2564_v52 }
  0x50   : > { %992 = vmatprep.subr.bf16.mxu0 %v2569_v53  ;;  %1033 = vmatprep.subr.bf16.mxu1 %v2574_v54 }
  0x51   : > { %697 = vmatprep.mubr.bf16.mxu0 %v3113_v4  ;;  %770 = vmatprep.mubr.bf16.mxu1 %v3113_v4 }
  0x53   : > { %993 = vmatpush1.bf16.msra.mxu0 %v2577_v55  ;;  %1034 = vmatpush1.bf16.msra.mxu1 %v2580_v56 }
  0x54   : > { %994 = vmatprep.subr.bf16.mxu0 %v2589_v59  ;;  %1035 = vmatprep.subr.bf16.mxu1 %v2592_v60 }
  0x56   : > { %698 = vmatmul.mubr.bf16.gmra.mrb[8].mxu0 %v2092_v61  ;;  %771 = vmatmul.mubr.bf16.gmra.mrb[8].mxu1 %v2092_v61 }
  0x57   : > { %995 = vmatpush1.bf16.msra.mxu0 %v2599_v62  ;;  %1036 = vmatpush1.bf16.msra.mxu1 %v2602_v63 }
  0x58   : > { %996 = vmatprep.subr.bf16.mxu0 %v2607_v0  ;;  %1037 = vmatprep.subr.bf16.mxu1 %v2610_v1 }
  0x59   : > { %707 = vmatprep.mubr.bf16.mxu0 %v3113_v4  ;;  %780 = vmatprep.mubr.bf16.mxu1 %v3113_v4 }
  0x5b   : > { %997 = vmatpush1.bf16.msra.mxu0 %v2613_v2  ;;  %1038 = vmatpush1.bf16.msra.mxu1 %v2618_v3 }
  0x5c   : > { %998 = vmatprep.subr.bf16.mxu0 %v2625_v7  ;;  %1039 = vmatprep.subr.bf16.mxu1 %v2628_v8 }
  0x5e   : > { %708 = vmatmul.mubr.bf16.gmra.mrb[12].mxu0 %v2093_v9  ;;  %781 = vmatmul.mubr.bf16.gmra.mrb[12].mxu1 %v2093_v9 }
  0x5f   : > { %999 = vmatpush1.bf16.msra.mxu0 %v2635_v10  ;;  %1040 = vmatpush1.bf16.msra.mxu1 %v2638_v11 }
  0x60   : > { %1000 = vmatprep.subr.bf16.mxu0 %v2643_v12  ;;  %1041 = vmatprep.subr.bf16.mxu1 %v2646_v13 }
  0x61   : > { %1018 = vmatprep.mubr.bf16.mxu0 %v3113_v4  ;;  %1059 = vmatprep.mubr.bf16.mxu1 %v3113_v4 }
  0x63   : > { %1001 = vmatpush1.bf16.msra.mxu0 %v2651_v14  ;;  %1042 = vmatpush1.bf16.msra.mxu1 %v2654_v15 }
  0x64   : > { %1092 = vmatprep.subr.bf16.mxu0 %v2521_v37  ;;  %1133 = vmatprep.subr.bf16.mxu1 %v2524_v38 }
  0x66   : > { %1019 = vmatmul.mubr.bf16.vlgmr.msra.gmra.mrb[16].mxu0 %v825_v17  ;;  %1060 = vmatmul.mubr.bf16.vlgmr.msra.gmra.mrb[16].mxu1 %v825_v17 }
  0x67   : > { %1093 = vmatpush1.bf16.msra.mxu0 %v2527_v40  ;;  %1134 = vmatpush1.bf16.msra.mxu1 %v2530_v41 }
  0x68   : > { %1094 = vmatprep.subr.bf16.mxu0 %v2535_v42  ;;  %1135 = vmatprep.subr.bf16.mxu1 %v2538_v43 }
  0x69   : > { %1124 = vmatprep.mubr.bf16.mxu0 %v3113_v4  ;;  %1165 = vmatprep.mubr.bf16.mxu1 %v3113_v4 }
  0x6b   : > { %1095 = vmatpush1.bf16.msra.mxu0 %v2541_v44  ;;  %1136 = vmatpush1.bf16.msra.mxu1 %v2544_v45 }
  0x6c   : > { %1096 = vmatprep.subr.bf16.mxu0 %v2551_v48  ;;  %1137 = vmatprep.subr.bf16.mxu1 %v2556_v49 }
  0x6f   : > { %1097 = vmatpush1.bf16.msra.mxu0 %v2561_v51  ;;  %1138 = vmatpush1.bf16.msra.mxu1 %v2564_v52 }
  0x70   : > { %1098 = vmatprep.subr.bf16.mxu0 %v2569_v53  ;;  %1139 = vmatprep.subr.bf16.mxu1 %v2574_v54 }
  0x73   : > { %1099 = vmatpush1.bf16.msra.mxu0 %v2577_v55  ;;  %1140 = vmatpush1.bf16.msra.mxu1 %v2580_v56 }
  0x74   : > { %1100 = vmatprep.subr.bf16.mxu0 %v2589_v59  ;;  %1141 = vmatprep.subr.bf16.mxu1 %v2592_v60 }
  0x77   : > { %1101 = vmatpush1.bf16.msra.mxu0 %v2599_v62  ;;  %1142 = vmatpush1.bf16.msra.mxu1 %v2602_v63 }
  0x78   : > { %1102 = vmatprep.subr.bf16.mxu0 %v2607_v0  ;;  %1143 = vmatprep.subr.bf16.mxu1 %v2610_v1 }
  0x7b   : > { %1103 = vmatpush1.bf16.msra.mxu0 %v2613_v2  ;;  %1144 = vmatpush1.bf16.msra.mxu1 %v2618_v3 }
  0x7c   : > { %1104 = vmatprep.subr.bf16.mxu0 %v2625_v7  ;;  %1145 = vmatprep.subr.bf16.mxu1 %v2628_v8 }
  0x7f   : > { %1105 = vmatpush1.bf16.msra.mxu0 %v2635_v10  ;;  %1146 = vmatpush1.bf16.msra.mxu1 %v2638_v11 }
  0x80   : > { %1106 = vmatprep.subr.bf16.mxu0 %v2643_v12  ;;  %1147 = vmatprep.subr.bf16.mxu1 %v2646_v13 }
  0x83   : > { %1107 = vmatpush1.bf16.msra.mxu0 %v2651_v14  ;;  %1148 = vmatpush1.bf16.msra.mxu1 %v2654_v15 }
  0x84   : > { %1199 = vmatprep.subr.bf16.mxu0 %v2521_v37  ;;  %1240 = vmatprep.subr.bf16.mxu1 %v2524_v38 }
 0x119   : > { %v2701_v26 = vpop.f32.mrb[0].mxu0  ;;  %v2703_v27 = vpop.f32.mrb[0].mxu1 }
 0x11a   : > { %v681_v30 = vpop.f32.mrb[1].mxu0  ;;  %v754_v31 = vpop.f32.mrb[1].mxu1 }
 0x11b   : > { %v683_v33 = vpop.f32.mrb[2].mxu0  ;;  %v756_v34 = vpop.f32.mrb[2].mxu1 }
 0x11c   : > { %v2707_v35 = vadd.f32 %v683_v33, %v444_v29  ;;  %v685_v36 = vpop.f32.mrb[3].mxu0  ;;  %v2710_v39 = vadd.f32 %v756_v34, %v2699_v25  ;;  %v758_v46 = vpop.f32.mrb[3].mxu1 }
 0x11d   : > { %v2712_v47 = vadd.f32 %v685_v36, %v448_v32  ;;  %v2715_v50 = vadd.f32 %v758_v46, %v2705_v28 }
 0x121   : > { %v689_v57 = vpop.f32.mrb[4].mxu0  ;;  %v762_v58 = vpop.f32.mrb[4].mxu1 }
 0x122   : > { %v2717_v61 = vadd.f32 %v689_v57, %v444_v29  ;;  %v691_v5 = vpop.f32.mrb[5].mxu0  ;;  %v2720_v6 = vadd.f32 %v762_v58, %v2699_v25  ;;  %v764_v9 = vpop.f32.mrb[5].mxu1 }
 0x123   : > { %v2722_v16 = vadd.f32 %v691_v5, %v448_v32  ;;  %v693_v17 = vpop.f32.mrb[6].mxu0  ;;  %v2725_v18 = vadd.f32 %v764_v9, %v2705_v28  ;;  %v766_v19 = vpop.f32.mrb[6].mxu1 }
 0x124   : > { %v2727_v20 = vadd.f32 %v693_v17, %v444_v29  ;;  %v695_v21 = vpop.f32.mrb[7].mxu0  ;;  %v2730_v22 = vadd.f32 %v766_v19, %v2699_v25  ;;  %v768_v23 = vpop.f32.mrb[7].mxu1 }
 0x125   : > { %3120 = vst [vmem:[#allocation5_spill] sm:$0xff] %v2725_v18  ;;  %v2732_v24 = vadd.f32 %v695_v21, %v448_v32  ;;  %v2735_v33 = vadd.f32 %v768_v23, %v2705_v28 }
 0x126   : > { %3121 = vst [vmem:[#allocation6_spill] sm:$0xff] %v2727_v20  ;;  %3122 = vst [vmem:[#allocation7_spill] sm:$0xff] %v2730_v22 }
 0x127   : > { %3123 = vst [vmem:[#allocation8_spill] sm:$0xff] %v2732_v24  ;;  %3124 = vst [vmem:[#allocation9_spill] sm:$0xff] %v2735_v33 }
 0x129   : > { %v699_v34 = vpop.f32.mrb[8].mxu0  ;;  %v772_v36 = vpop.f32.mrb[8].mxu1 }
 0x12a   : > { %v2737_v46 = vadd.f32 %v699_v34, %v444_v29  ;;  %v701_v57 = vpop.f32.mrb[9].mxu0  ;;  %v2740_v58 = vadd.f32 %v772_v36, %v2699_v25  ;;  %v774_v5 = vpop.f32.mrb[9].mxu1 }
 0x12b   : > { %v2742_v9 = vadd.f32 %v701_v57, %v448_v32  ;;  %v703_v17 = vpop.f32.mrb[10].mxu0  ;;  %v2745_v19 = vadd.f32 %v774_v5, %v2705_v28  ;;  %v776_v21 = vpop.f32.mrb[10].mxu1 }
 0x12c   : > { %3125 = vst [vmem:[#allocation10_spill] sm:$0xff] %v2737_v46  ;;  %3126 = vst [vmem:[#allocation11_spill] sm:$0xff] %v2740_v58  ;;  %v2747_v4 = vadd.f32 %v703_v17, %v444_v29  ;;  %v705_v23 = vpop.f32.mrb[11].mxu0  ;;  %v2750_v33 = vadd.f32 %v776_v21, %v2699_v25  ;;  %v778_v34 = vpop.f32.mrb[11].mxu1 }
 0x12d   : > { %3127 = vst [vmem:[#allocation12_spill] sm:$0xff] %v2742_v9  ;;  %3128 = vst [vmem:[#allocation13_spill] sm:$0xff] %v2745_v19  ;;  %v2752_v46 = vadd.f32 %v705_v23, %v448_v32  ;;  %v2755_v36 = vadd.f32 %v778_v34, %v2705_v28 }
 0x12e   : > { %3129 = vst [vmem:[#allocation14_spill] sm:$0xff] %v2747_v4  ;;  %3130 = vst [vmem:[#allocation15_spill] sm:$0xff] %v2750_v33 }
 0x12f   : > { %3131 = vst [vmem:[#allocation16_spill] sm:$0xff] %v2752_v46  ;;  %3132 = vst [vmem:[#allocation17_spill] sm:$0xff] %v2755_v36 }
 0x131   : > { %v709_v58 = vpop.f32.mrb[12].mxu0  ;;  %v782_v57 = vpop.f32.mrb[12].mxu1 }
 0x132   : > { %v2757_v9 = vadd.f32 %v709_v58, %v444_v29  ;;  %v711_v24 = vpop.f32.mrb[13].mxu0  ;;  %v2760_v5 = vadd.f32 %v782_v57, %v2699_v25  ;;  %v784_v17 = vpop.f32.mrb[13].mxu1 }
 0x133   : > { %v2762_v4 = vadd.f32 %v711_v24, %v448_v32  ;;  %v713_v19 = vpop.f32.mrb[14].mxu0  ;;  %v2765_v21 = vadd.f32 %v784_v17, %v2705_v28  ;;  %v786_v23 = vpop.f32.mrb[14].mxu1  ;;  %v680_v24 = vadd.f32 %v2701_v26, %v444_v29  ;;  %v682_v17 = vadd.f32 %v681_v30, %v448_v32 }
 0x134   : > { %3133 = vst [vmem:[#allocation18_spill] sm:$0xff] %v2757_v9  ;;  %3134 = vst [vmem:[#allocation19_spill] sm:$0xff] %v2760_v5  ;;  %v2767_v46 = vadd.f32 %v713_v19, %v444_v29  ;;  %v715_v34 = vpop.f32.mrb[15].mxu0  ;;  %v2770_v36 = vadd.f32 %v786_v23, %v2699_v25  ;;  %v788_v58 = vpop.f32.mrb[15].mxu1 }
 0x135   : > { %3135 = vst [vmem:[#allocation20_spill] sm:$0xff] %v2762_v4  ;;  %3136 = vst [vmem:[#allocation21_spill] sm:$0xff] %v2765_v21  ;;  %v2772_v9 = vadd.f32 %v715_v34, %v448_v32  ;;  %v2775_v57 = vadd.f32 %v788_v58, %v2705_v28  ;;  %v753_v4 = vadd.f32 %v2703_v27, %v2699_v25 }
 0x136   : > { %3137 = vst [vmem:[#allocation22_spill] sm:$0xff] %v2767_v46  ;;  %3138 = vst [vmem:[#allocation23_spill] sm:$0xff] %v2770_v36  ;;  %v755_v21 = vadd.f32 %v754_v31, %v2705_v28  ;;  %v824_v31 = vld [vmem:[#allocation3] sm:$0xff] }
 0x137   : > { %3139 = vst [vmem:[#allocation24_spill] sm:$0xff] %v2772_v9  ;;  %3140 = vst [vmem:[#allocation25_spill] sm:$0xff] %v2775_v57 }
 0x139   : > { %v1020_v19 = vpop.f32.mrb[16].mxu0  ;;  %v1061_v46 = vpop.f32.mrb[16].mxu1 }
 0x13a   : > { %v1068_v5 = vadd.f32 %v1020_v19, %v680_v24  ;;  %v1070_v33 = vadd.f32 %v1061_v46, %v753_v4  ;;  %v1022_v23 = vpop.f32.mrb[17].mxu0  ;;  %v1063_v36 = vpop.f32.mrb[17].mxu1  ;;  %v3141_v24 = vmov 0  }
 0x13b   : > { %v1069_v22 = vadd.f32 %v1022_v23, %v682_v17  ;;  %v1071_v34 = vadd.f32 %v1063_v36, %v755_v21  ;;  %v1024_v9 = vpop.f32.mrb[18].mxu0  ;;  %v1065_v20 = vpop.f32.mrb[18].mxu1 }
 0x13c   : > { %v1077_v58 = vmul.f32 0.5, %v1068_v5  ;;  %v1025_v57 = vpop.f32.mrb[19].mxu0  ;;  %v1066_v18 = vpop.f32.mrb[19].mxu1 }
 0x13d   : > { %v1072_v26 = vmul.f32 0.5, %v1069_v22  ;;  %v1085_v25 = vmul.f32 0.5, %v1071_v34 }
 0x13e   : > { %2231 = vtanh.f32 %v1077_v58 }
 0x13f   : > { %2233 = vtanh.f32 %v1072_v26 }
 0x140   : > { %2235 = vtanh.f32 %v1070_v33 }
 0x141   : > { %2237 = vtanh.f32 %v1085_v25 }
 0x148   : > { %v2232_v27 = vpop.eup %2231 }
 0x149   : > { %v2234_v28 = vpop.eup %2233  ;;  %v1079_v29 = vmul.f32 0.5, %v2232_v27 }
 0x14a   : > { %v1074_v30 = vmul.f32 0.5, %v2234_v28  ;;  %v2236_v32 = vpop.eup %2235 }
 0x14b   : > { %v1080_v4 = vadd.f32 0.5, %v1079_v29  ;;  %v2238_v18 = vpop.eup %2237 }
 0x14c   : > { %v1075_v46 = vadd.f32 0.5, %v1074_v30  ;;  %v1087_v22 = vmul.f32 0.5, %v2238_v18 }
 0x14d   : > { %v1082_v9 = vmul.f32 %v2236_v32, %v1080_v4 }
 0x14e   : > { %v1076_v20 = vmul.f32 %v1075_v46, %v824_v31  ;;  %v1088_v33 = vadd.f32 0.5, %v1087_v22 }
 0x150   : > { %v2781_v36 = vadd.f32 %v1082_v9, %v1076_v20 }
 0x152   : > { %2239 = vtanh.f32 %v2781_v36 }
 0x15c   : > { %v2240_v5 = vpop.eup %2239 }
 0x15d   : > { %v1089_v21 = vmul.f32 %v2240_v5, %v1088_v33 }
 0x15f   : > { %1090 = vst [vmem:[%s2481_s16] sm:$0xff] %v1089_v21  ;;  %v1091_v57 = vpack.c.bf16 %v1089_v21, %v1089_v21 }
 0x161   : > { %1125 = vmatmul.mubr.bf16.vlgmr.msra.gmra.mrb[20].mxu0 %v1091_v57  ;;  %1166 = vmatmul.mubr.bf16.vlgmr.msra.gmra.mrb[20].mxu1 %v1091_v57 }
 0x162   : > { %1200 = vmatpush1.bf16.msra.mxu0 %v2527_v40  ;;  %1241 = vmatpush1.bf16.msra.mxu1 %v2530_v41 }
 0x163   : > { %1201 = vmatprep.subr.bf16.mxu0 %v2535_v42  ;;  %1242 = vmatprep.subr.bf16.mxu1 %v2538_v43 }
 0x164   : > { %1231 = vmatprep.mubr.bf16.mxu0 %v3141_v24  ;;  %1272 = vmatprep.mubr.bf16.mxu1 %v3141_v24 }
 0x166   : > { %1202 = vmatpush1.bf16.msra.mxu0 %v2541_v44  ;;  %1243 = vmatpush1.bf16.msra.mxu1 %v2544_v45 }
 0x167   : > { %1203 = vmatprep.subr.bf16.mxu0 %v2551_v48  ;;  %1244 = vmatprep.subr.bf16.mxu1 %v2556_v49 }
 0x16a   : > { %1204 = vmatpush1.bf16.msra.mxu0 %v2561_v51  ;;  %1245 = vmatpush1.bf16.msra.mxu1 %v2564_v52 }
 0x16b   : > { %1205 = vmatprep.subr.bf16.mxu0 %v2569_v53  ;;  %1246 = vmatprep.subr.bf16.mxu1 %v2574_v54 }
 0x16e   : > { %1206 = vmatpush1.bf16.msra.mxu0 %v2577_v55  ;;  %1247 = vmatpush1.bf16.msra.mxu1 %v2580_v56 }
 0x16f   : > { %1207 = vmatprep.subr.bf16.mxu0 %v2589_v59  ;;  %1248 = vmatprep.subr.bf16.mxu1 %v2592_v60 }
 0x172   : > { %1208 = vmatpush1.bf16.msra.mxu0 %v2599_v62  ;;  %1249 = vmatpush1.bf16.msra.mxu1 %v2602_v63 }
 0x173   : > { %1209 = vmatprep.subr.bf16.mxu0 %v2607_v0  ;;  %1250 = vmatprep.subr.bf16.mxu1 %v2610_v1 }
 0x176   : > { %1210 = vmatpush1.bf16.msra.mxu0 %v2613_v2  ;;  %1251 = vmatpush1.bf16.msra.mxu1 %v2618_v3 }
 0x177   : > { %1211 = vmatprep.subr.bf16.mxu0 %v2625_v7  ;;  %1252 = vmatprep.subr.bf16.mxu1 %v2628_v8 }
 0x17a   : > { %1212 = vmatpush1.bf16.msra.mxu0 %v2635_v10  ;;  %1253 = vmatpush1.bf16.msra.mxu1 %v2638_v11 }
 0x17b   : > { %1213 = vmatprep.subr.bf16.mxu0 %v2643_v12  ;;  %1254 = vmatprep.subr.bf16.mxu1 %v2646_v13 }
 0x17e   : > { %1214 = vmatpush1.bf16.msra.mxu0 %v2651_v14  ;;  %1255 = vmatpush1.bf16.msra.mxu1 %v2654_v15 }
 0x17f   : > { %1306 = vmatprep.subr.bf16.mxu0 %v2521_v37  ;;  %1347 = vmatprep.subr.bf16.mxu1 %v2524_v38 }
 0x234   : > { %v1126_v17 = vpop.f32.mrb[20].mxu0  ;;  %v1167_v19 = vpop.f32.mrb[20].mxu1 }
 0x235   : > { %v1174_v23 = vadd.f32 %v1126_v17, %v2707_v35  ;;  %v1176_v34 = vadd.f32 %v1167_v19, %v2710_v39  ;;  %v1128_v58 = vpop.f32.mrb[21].mxu0  ;;  %v1169_v26 = vpop.f32.mrb[21].mxu1 }
 0x236   : > { %v1175_v25 = vadd.f32 %v1128_v58, %v2712_v47  ;;  %v1177_v27 = vadd.f32 %v1169_v26, %v2715_v50  ;;  %v1130_v28 = vpop.f32.mrb[22].mxu0  ;;  %v1171_v29 = vpop.f32.mrb[22].mxu1 }
 0x237   : > { %v1183_v30 = vmul.f32 0.5, %v1174_v23  ;;  %v1131_v4 = vpop.f32.mrb[23].mxu0  ;;  %v1172_v31 = vpop.f32.mrb[23].mxu1 }
 0x238   : > { %v1178_v32 = vmul.f32 0.5, %v1175_v25  ;;  %v1191_v46 = vmul.f32 0.5, %v1177_v27 }
 0x239   : > { %2241 = vtanh.f32 %v1183_v30  ;;  %v3142_v30 = vld [vmem:[#allocation5_spill] sm:$0xff] }
 0x23a   : > { %2243 = vtanh.f32 %v1178_v32 }
 0x23b   : > { %2245 = vtanh.f32 %v1176_v34 }
 0x23c   : > { %2247 = vtanh.f32 %v1191_v46 }
 0x243   : > { %v2242_v9 = vpop.eup %2241 }
 0x244   : > { %v2244_v35 = vpop.eup %2243  ;;  %v1185_v39 = vmul.f32 0.5, %v2242_v9 }
 0x245   : > { %v1180_v20 = vmul.f32 0.5, %v2244_v35  ;;  %v2246_v47 = vpop.eup %2245 }
 0x246   : > { %v1186_v18 = vadd.f32 0.5, %v1185_v39  ;;  %v2248_v21 = vpop.eup %2247 }
 0x247   : > { %v1181_v22 = vadd.f32 0.5, %v1180_v20  ;;  %v1193_v57 = vmul.f32 0.5, %v2248_v21 }
 0x248   : > { %v1188_v50 = vmul.f32 %v2246_v47, %v1186_v18 }
 0x249   : > { %v1182_v33 = vmul.f32 %v1181_v22, %v2781_v36  ;;  %v1194_v17 = vadd.f32 0.5, %v1193_v57 }
 0x24b   : > { %v2824_v5 = vadd.f32 %v1188_v50, %v1182_v33 }
 0x24d   : > { %2249 = vtanh.f32 %v2824_v5 }
 0x257   : > { %v2250_v19 = vpop.eup %2249 }
 0x258   : > { %v1195_v23 = vmul.f32 %v2250_v19, %v1194_v17 }
 0x25a   : > { %2079 = vst [vmem:[%s2481_s16 + $0x8] sm:$0xff] %v1195_v23  ;;  %v1198_v34 = vpack.c.bf16 %v1195_v23, %v1195_v23 }
 0x25c   : > { %1232 = vmatmul.mubr.bf16.vlgmr.msra.gmra.mrb[24].mxu0 %v1198_v34  ;;  %1273 = vmatmul.mubr.bf16.vlgmr.msra.gmra.mrb[24].mxu1 %v1198_v34 }
 0x25d   : > { %1307 = vmatpush1.bf16.msra.mxu0 %v2527_v40  ;;  %1348 = vmatpush1.bf16.msra.mxu1 %v2530_v41 }
 0x25e   : > { %1308 = vmatprep.subr.bf16.mxu0 %v2535_v42  ;;  %1349 = vmatprep.subr.bf16.mxu1 %v2538_v43 }
 0x25f   : > { %1338 = vmatprep.mubr.bf16.mxu0 %v3141_v24  ;;  %1379 = vmatprep.mubr.bf16.mxu1 %v3141_v24 }
 0x261   : > { %1309 = vmatpush1.bf16.msra.mxu0 %v2541_v44  ;;  %1350 = vmatpush1.bf16.msra.mxu1 %v2544_v45 }
 0x262   : > { %1310 = vmatprep.subr.bf16.mxu0 %v2551_v48  ;;  %1351 = vmatprep.subr.bf16.mxu1 %v2556_v49 }
 0x265   : > { %1311 = vmatpush1.bf16.msra.mxu0 %v2561_v51  ;;  %1352 = vmatpush1.bf16.msra.mxu1 %v2564_v52 }
 0x266   : > { %1312 = vmatprep.subr.bf16.mxu0 %v2569_v53  ;;  %1353 = vmatprep.subr.bf16.mxu1 %v2574_v54 }
 0x269   : > { %1313 = vmatpush1.bf16.msra.mxu0 %v2577_v55  ;;  %1354 = vmatpush1.bf16.msra.mxu1 %v2580_v56 }
 0x26a   : > { %1314 = vmatprep.subr.bf16.mxu0 %v2589_v59  ;;  %1355 = vmatprep.subr.bf16.mxu1 %v2592_v60 }
 0x26d   : > { %1315 = vmatpush1.bf16.msra.mxu0 %v2599_v62  ;;  %1356 = vmatpush1.bf16.msra.mxu1 %v2602_v63 }
 0x26e   : > { %1316 = vmatprep.subr.bf16.mxu0 %v2607_v0  ;;  %1357 = vmatprep.subr.bf16.mxu1 %v2610_v1 }
 0x271   : > { %1317 = vmatpush1.bf16.msra.mxu0 %v2613_v2  ;;  %1358 = vmatpush1.bf16.msra.mxu1 %v2618_v3 }
 0x272   : > { %1318 = vmatprep.subr.bf16.mxu0 %v2625_v7  ;;  %1359 = vmatprep.subr.bf16.mxu1 %v2628_v8 }
 0x275   : > { %1319 = vmatpush1.bf16.msra.mxu0 %v2635_v10  ;;  %1360 = vmatpush1.bf16.msra.mxu1 %v2638_v11 }
 0x276   : > { %1320 = vmatprep.subr.bf16.mxu0 %v2643_v12  ;;  %1361 = vmatprep.subr.bf16.mxu1 %v2646_v13 }
 0x279   : > { %1321 = vmatpush1.bf16.msra.mxu0 %v2651_v14  ;;  %1362 = vmatpush1.bf16.msra.mxu1 %v2654_v15 }
 0x27a   : > { %1413 = vmatprep.subr.bf16.mxu0 %v2521_v37  ;;  %1454 = vmatprep.subr.bf16.mxu1 %v2524_v38 }
 0x32f   : > { %v1233_v36 = vpop.f32.mrb[24].mxu0  ;;  %v1274_v58 = vpop.f32.mrb[24].mxu1 }
 0x330   : > { %v1281_v26 = vadd.f32 %v1233_v36, %v2717_v61  ;;  %v1283_v25 = vadd.f32 %v1274_v58, %v2720_v6  ;;  %v1235_v27 = vpop.f32.mrb[25].mxu0  ;;  %v1276_v28 = vpop.f32.mrb[25].mxu1 }
 0x331   : > { %v1282_v29 = vadd.f32 %v1235_v27, %v2722_v16  ;;  %v1284_v4 = vadd.f32 %v1276_v28, %v3142_v30  ;;  %v1237_v31 = vpop.f32.mrb[26].mxu0  ;;  %v1278_v32 = vpop.f32.mrb[26].mxu1  ;;  %v3144_v28 = vld [vmem:[#allocation7_spill] sm:$0xff] }
 0x332   : > { %v1290_v46 = vmul.f32 0.5, %v1281_v26  ;;  %v1238_v9 = vpop.f32.mrb[27].mxu0  ;;  %v1279_v35 = vpop.f32.mrb[27].mxu1  ;;  %v3145_v31 = vld [vmem:[#allocation8_spill] sm:$0xff] }
 0x333   : > { %v1285_v39 = vmul.f32 0.5, %v1282_v29  ;;  %v1298_v20 = vmul.f32 0.5, %v1284_v4 }
 0x334   : > { %2251 = vtanh.f32 %v1290_v46  ;;  %v3146_v46 = vld [vmem:[#allocation9_spill] sm:$0xff] }
 0x335   : > { %2253 = vtanh.f32 %v1285_v39 }
 0x336   : > { %2255 = vtanh.f32 %v1283_v25  ;;  %v3143_v25 = vld [vmem:[#allocation6_spill] sm:$0xff] }
 0x337   : > { %2257 = vtanh.f32 %v1298_v20 }
 0x33e   : > { %v2252_v18 = vpop.eup %2251 }
 0x33f   : > { %v2254_v61 = vpop.eup %2253  ;;  %v1292_v6 = vmul.f32 0.5, %v2252_v18 }
 0x340   : > { %v1287_v47 = vmul.f32 0.5, %v2254_v61  ;;  %v2256_v16 = vpop.eup %2255 }
 0x341   : > { %v1293_v22 = vadd.f32 0.5, %v1292_v6  ;;  %v2258_v17 = vpop.eup %2257 }
 0x342   : > { %v1288_v50 = vadd.f32 0.5, %v1287_v47  ;;  %v1300_v19 = vmul.f32 0.5, %v2258_v17 }
 0x343   : > { %v1295_v33 = vmul.f32 %v2256_v16, %v1293_v22 }
 0x344   : > { %v1289_v21 = vmul.f32 %v1288_v50, %v2824_v5  ;;  %v1301_v23 = vadd.f32 0.5, %v1300_v19 }
 0x346   : > { %v2867_v57 = vadd.f32 %v1295_v33, %v1289_v21 }
 0x348   : > { %2259 = vtanh.f32 %v2867_v57 }
 0x352   : > { %v2260_v34 = vpop.eup %2259 }
 0x353   : > { %v1302_v36 = vmul.f32 %v2260_v34, %v1301_v23 }
 0x355   : > { %2080 = vst [vmem:[%s2481_s16 + $0x10] sm:$0xff] %v1302_v36  ;;  %v1305_v58 = vpack.c.bf16 %v1302_v36, %v1302_v36 }
 0x357   : > { %1339 = vmatmul.mubr.bf16.vlgmr.msra.gmra.mrb[28].mxu0 %v1305_v58  ;;  %1380 = vmatmul.mubr.bf16.vlgmr.msra.gmra.mrb[28].mxu1 %v1305_v58 }
 0x358   : > { %1414 = vmatpush1.bf16.msra.mxu0 %v2527_v40  ;;  %1455 = vmatpush1.bf16.msra.mxu1 %v2530_v41 }
 0x359   : > { %1415 = vmatprep.subr.bf16.mxu0 %v2535_v42  ;;  %1456 = vmatprep.subr.bf16.mxu1 %v2538_v43 }
 0x35a   : > { %1445 = vmatprep.mubr.bf16.mxu0 %v3141_v24  ;;  %1486 = vmatprep.mubr.bf16.mxu1 %v3141_v24 }
 0x35c   : > { %1416 = vmatpush1.bf16.msra.mxu0 %v2541_v44  ;;  %1457 = vmatpush1.bf16.msra.mxu1 %v2544_v45 }
 0x35d   : > { %1417 = vmatprep.subr.bf16.mxu0 %v2551_v48  ;;  %1458 = vmatprep.subr.bf16.mxu1 %v2556_v49 }
 0x360   : > { %1418 = vmatpush1.bf16.msra.mxu0 %v2561_v51  ;;  %1459 = vmatpush1.bf16.msra.mxu1 %v2564_v52 }
 0x361   : > { %1419 = vmatprep.subr.bf16.mxu0 %v2569_v53  ;;  %1460 = vmatprep.subr.bf16.mxu1 %v2574_v54 }
 0x364   : > { %1420 = vmatpush1.bf16.msra.mxu0 %v2577_v55  ;;  %1461 = vmatpush1.bf16.msra.mxu1 %v2580_v56 }
 0x365   : > { %1421 = vmatprep.subr.bf16.mxu0 %v2589_v59  ;;  %1462 = vmatprep.subr.bf16.mxu1 %v2592_v60 }
 0x368   : > { %1422 = vmatpush1.bf16.msra.mxu0 %v2599_v62  ;;  %1463 = vmatpush1.bf16.msra.mxu1 %v2602_v63 }
 0x369   : > { %1423 = vmatprep.subr.bf16.mxu0 %v2607_v0  ;;  %1464 = vmatprep.subr.bf16.mxu1 %v2610_v1 }
 0x36c   : > { %1424 = vmatpush1.bf16.msra.mxu0 %v2613_v2  ;;  %1465 = vmatpush1.bf16.msra.mxu1 %v2618_v3 }
 0x36d   : > { %1425 = vmatprep.subr.bf16.mxu0 %v2625_v7  ;;  %1466 = vmatprep.subr.bf16.mxu1 %v2628_v8 }
 0x370   : > { %1426 = vmatpush1.bf16.msra.mxu0 %v2635_v10  ;;  %1467 = vmatpush1.bf16.msra.mxu1 %v2638_v11 }
 0x371   : > { %1427 = vmatprep.subr.bf16.mxu0 %v2643_v12  ;;  %1468 = vmatprep.subr.bf16.mxu1 %v2646_v13 }
 0x374   : > { %1428 = vmatpush1.bf16.msra.mxu0 %v2651_v14  ;;  %1469 = vmatpush1.bf16.msra.mxu1 %v2654_v15 }
 0x375   : > { %1520 = vmatprep.subr.bf16.mxu0 %v2521_v37  ;;  %1561 = vmatprep.subr.bf16.mxu1 %v2524_v38 }
 0x42a   : > { %v1340_v5 = vpop.f32.mrb[28].mxu0  ;;  %v1381_v26 = vpop.f32.mrb[28].mxu1 }
 0x42b   : > { %v1388_v27 = vadd.f32 %v1340_v5, %v3143_v25  ;;  %v1390_v29 = vadd.f32 %v1381_v26, %v3144_v28  ;;  %v1342_v30 = vpop.f32.mrb[29].mxu0  ;;  %v1383_v4 = vpop.f32.mrb[29].mxu1 }
 0x42c   : > { %v1389_v32 = vadd.f32 %v1342_v30, %v3145_v31  ;;  %v1391_v9 = vadd.f32 %v1383_v4, %v3146_v46  ;;  %v1344_v35 = vpop.f32.mrb[30].mxu0  ;;  %v1385_v39 = vpop.f32.mrb[30].mxu1 }
 0x42d   : > { %v1397_v20 = vmul.f32 0.5, %v1388_v27  ;;  %v1345_v18 = vpop.f32.mrb[31].mxu0  ;;  %v1386_v61 = vpop.f32.mrb[31].mxu1 }
 0x42e   : > { %v1392_v37 = vmul.f32 0.5, %v1389_v32  ;;  %v1405_v38 = vmul.f32 0.5, %v1391_v9 }
 0x42f   : > { %2261 = vtanh.f32 %v1397_v20 }
 0x430   : > { %2263 = vtanh.f32 %v1392_v37 }
 0x431   : > { %2265 = vtanh.f32 %v1390_v29 }
 0x432   : > { %2267 = vtanh.f32 %v1405_v38 }
 0x439   : > { %v2262_v6 = vpop.eup %2261 }
 0x43a   : > { %v2264_v47 = vpop.eup %2263  ;;  %v1399_v22 = vmul.f32 0.5, %v2262_v6 }
 0x43b   : > { %v1394_v16 = vmul.f32 0.5, %v2264_v47  ;;  %v2266_v33 = vpop.eup %2265 }
 0x43c   : > { %v1400_v50 = vadd.f32 0.5, %v1399_v22  ;;  %v2268_v34 = vpop.eup %2267 }
 0x43d   : > { %v1395_v21 = vadd.f32 0.5, %v1394_v16  ;;  %v1407_v36 = vmul.f32 0.5, %v2268_v34  ;;  %v2982_v34 = vld [vmem:[%s2470_s28 + $0x20] ss:$16 sps:$4 sm:$0xff]  }
 0x43e   : > { %v1402_v17 = vmul.f32 %v2266_v33, %v1400_v50 }
 0x43f   : > { %v1396_v19 = vmul.f32 %v1395_v21, %v2867_v57  ;;  %v1408_v58 = vadd.f32 0.5, %v1407_v36  ;;  %v2964_v21 = vld [vmem:[%s2470_s28] ss:$16 sps:$4 sm:$0xff]   ;;  %v2986_v36 = vld [vmem:[%s2470_s28 + $0x28] ss:$16 sps:$4 sm:$0xff]  }
 0x441   : > { %v2910_v23 = vadd.f32 %v1402_v17, %v1396_v19  ;;  %v2968_v17 = vld [vmem:[%s2470_s28 + $0x8] ss:$16 sps:$4 sm:$0xff]   ;;  %v2972_v19 = vld [vmem:[%s2470_s28 + $0x24] ss:$16 sps:$4 sm:$0xff]  }
 0x443   : > { %2269 = vtanh.f32 %v2910_v23 }
 0x44d   : > { %v2270_v5 = vpop.eup %2269 }
 0x44e   : > { %v1409_v26 = vmul.f32 %v2270_v5, %v1408_v58  ;;  %v2990_v58 = vld [vmem:[%s2470_s28 + $0x44] ss:$16 sps:$4 sm:$0xff]   ;;  %v2994_v5 = vld [vmem:[%s2470_s28 + $0x4c] ss:$16 sps:$4 sm:$0xff]  }
 0x450   : > { %2081 = vst [vmem:[%s2481_s16 + $0x18] sm:$0xff] %v1409_v26  ;;  %v1412_v25 = vpack.c.bf16 %v1409_v26, %v1409_v26  ;;  %v2998_v26 = vld [vmem:[%s2470_s28 + $0x40] ss:$16 sps:$4 sm:$0xff]  }
 0x452   : > { %1446 = vmatmul.mubr.bf16.vlgmr.msra.gmra.mrb[32].mxu0 %v1412_v25  ;;  %1487 = vmatmul.mubr.bf16.vlgmr.msra.gmra.mrb[32].mxu1 %v1412_v25  ;;  %v3002_v25 = vld [vmem:[%s2470_s28 + $0x48] ss:$16 sps:$4 sm:$0xff]  }
 0x453   : > { %1521 = vmatpush1.bf16.msra.mxu0 %v2527_v40  ;;  %1562 = vmatpush1.bf16.msra.mxu1 %v2530_v41  ;;  %v2947_v40 = vld [vmem:[%s2470_s28 + $0x4] ss:$16 sps:$4 sm:$0xff]   ;;  %v2951_v41 = vld [vmem:[%s2470_s28 + $0xc] ss:$16 sps:$4 sm:$0xff]  }
 0x454   : > { %1522 = vmatprep.subr.bf16.mxu0 %v2535_v42  ;;  %1563 = vmatprep.subr.bf16.mxu1 %v2538_v43 }
 0x455   : > { %1552 = vmatprep.mubr.bf16.mxu0 %v3141_v24  ;;  %1593 = vmatprep.mubr.bf16.mxu1 %v3141_v24 }
 0x457   : > { %1523 = vmatpush1.bf16.msra.mxu0 %v2541_v44  ;;  %1564 = vmatpush1.bf16.msra.mxu1 %v2544_v45  ;;  %v3147_v44 = vld [vmem:[#allocation10_spill] sm:$0xff] }
 0x458   : > { %1524 = vmatprep.subr.bf16.mxu0 %v2551_v48  ;;  %1565 = vmatprep.subr.bf16.mxu1 %v2556_v49  ;;  %v3148_v48 = vld [vmem:[#allocation11_spill] sm:$0xff] }
 0x45b   : > { %1525 = vmatpush1.bf16.msra.mxu0 %v2561_v51  ;;  %1566 = vmatpush1.bf16.msra.mxu1 %v2564_v52 }
 0x45c   : > { %1526 = vmatprep.subr.bf16.mxu0 %v2569_v53  ;;  %1567 = vmatprep.subr.bf16.mxu1 %v2574_v54  ;;  %v3149_v53 = vld [vmem:[#allocation12_spill] sm:$0xff] }
 0x45f   : > { %1527 = vmatpush1.bf16.msra.mxu0 %v2577_v55  ;;  %1568 = vmatpush1.bf16.msra.mxu1 %v2580_v56  ;;  %v3150_v55 = vld [vmem:[#allocation13_spill] sm:$0xff] }
 0x460   : > { %1528 = vmatprep.subr.bf16.mxu0 %v2589_v59  ;;  %1569 = vmatprep.subr.bf16.mxu1 %v2592_v60 }
 0x463   : > { %1529 = vmatpush1.bf16.msra.mxu0 %v2599_v62  ;;  %1570 = vmatpush1.bf16.msra.mxu1 %v2602_v63 }
 0x464   : > { %1530 = vmatprep.subr.bf16.mxu0 %v2607_v0  ;;  %1571 = vmatprep.subr.bf16.mxu1 %v2610_v1 }
 0x467   : > { %1531 = vmatpush1.bf16.msra.mxu0 %v2613_v2  ;;  %1572 = vmatpush1.bf16.msra.mxu1 %v2618_v3 }
 0x468   : > { %1532 = vmatprep.subr.bf16.mxu0 %v2625_v7  ;;  %1573 = vmatprep.subr.bf16.mxu1 %v2628_v8 }
 0x46b   : > { %1533 = vmatpush1.bf16.msra.mxu0 %v2635_v10  ;;  %1574 = vmatpush1.bf16.msra.mxu1 %v2638_v11 }
 0x46c   : > { %1534 = vmatprep.subr.bf16.mxu0 %v2643_v12  ;;  %1575 = vmatprep.subr.bf16.mxu1 %v2646_v13 }
 0x46f   : > { %1535 = vmatpush1.bf16.msra.mxu0 %v2651_v14  ;;  %1576 = vmatpush1.bf16.msra.mxu1 %v2654_v15 }
 0x470   : > { %1627 = vmatprep.subr.bf16.mxu0 %v2947_v40  ;;  %1668 = vmatprep.subr.bf16.mxu1 %v2951_v41 }
 0x525   : > { %v1447_v42 = vpop.f32.mrb[32].mxu0  ;;  %v1488_v43 = vpop.f32.mrb[32].mxu1 }
 0x526   : > { %v1495_v45 = vadd.f32 %v1447_v42, %v3147_v44  ;;  %v1497_v49 = vadd.f32 %v1488_v43, %v3148_v48  ;;  %v1449_v51 = vpop.f32.mrb[33].mxu0  ;;  %v1490_v52 = vpop.f32.mrb[33].mxu1  ;;  %v3006_v42 = vld [vmem:[%s2470_s28 + $0x64] ss:$16 sps:$4 sm:$0xff]   ;;  %v3010_v43 = vld [vmem:[%s2470_s28 + $0x6c] ss:$16 sps:$4 sm:$0xff]  }
 0x527   : > { %v1496_v54 = vadd.f32 %v1449_v51, %v3149_v53  ;;  %v1498_v56 = vadd.f32 %v1490_v52, %v3150_v55  ;;  %v1451_v57 = vpop.f32.mrb[34].mxu0  ;;  %v1492_v27 = vpop.f32.mrb[34].mxu1  ;;  %v3014_v44 = vld [vmem:[%s2470_s28 + $0x60] ss:$16 sps:$4 sm:$0xff]  }
 0x528   : > { %v1504_v28 = vmul.f32 0.5, %v1495_v45  ;;  %v1452_v29 = vpop.f32.mrb[35].mxu0  ;;  %v1493_v30 = vpop.f32.mrb[35].mxu1  ;;  %v3018_v45 = vld [vmem:[%s2470_s28 + $0x68] ss:$16 sps:$4 sm:$0xff]  }
 0x529   : > { %v1499_v4 = vmul.f32 0.5, %v1496_v54  ;;  %v1512_v31 = vmul.f32 0.5, %v1498_v56 }
 0x52a   : > { %2271 = vtanh.f32 %v1504_v28 }
 0x52b   : > { %2273 = vtanh.f32 %v1499_v4 }
 0x52c   : > { %2275 = vtanh.f32 %v1497_v49 }
 0x52d   : > { %2277 = vtanh.f32 %v1512_v31 }
 0x534   : > { %v2272_v32 = vpop.eup %2271 }
 0x535   : > { %v2274_v46 = vpop.eup %2273  ;;  %v1506_v9 = vmul.f32 0.5, %v2272_v32 }
 0x536   : > { %v1501_v35 = vmul.f32 0.5, %v2274_v46  ;;  %v2276_v20 = vpop.eup %2275 }
 0x537   : > { %v1507_v39 = vadd.f32 0.5, %v1506_v9  ;;  %v2278_v6 = vpop.eup %2277  ;;  %v2328_v9 = vld [vmem:[%s2470_s28 + $0x8c] ss:$16 sps:$4 sm:$0xff]  }
 0x538   : > { %v1502_v18 = vadd.f32 0.5, %v1501_v35  ;;  %v1514_v47 = vmul.f32 0.5, %v2278_v6  ;;  %v2329_v35 = vld [vmem:[%s2470_s28 + $0x80] ss:$16 sps:$4 sm:$0xff]   ;;  %v2336_v6 = vld [vmem:[%s2470_s28 + $0xcc] ss:$16 sps:$4 sm:$0xff]  }
 0x539   : > { %v1509_v61 = vmul.f32 %v2276_v20, %v1507_v39  ;;  %v2330_v39 = vld [vmem:[%s2470_s28 + $0x88] ss:$16 sps:$4 sm:$0xff]   ;;  %v2331_v20 = vld [vmem:[%s2470_s28 + $0xa4] ss:$16 sps:$4 sm:$0xff]  }
 0x53a   : > { %v1503_v37 = vmul.f32 %v1502_v18, %v2910_v23  ;;  %v1515_v22 = vadd.f32 0.5, %v1514_v47  ;;  %v2976_v23 = vld [vmem:[%s2470_s28 + $0x2c] ss:$16 sps:$4 sm:$0xff]   ;;  %v2337_v47 = vld [vmem:[%s2470_s28 + $0xc0] ss:$16 sps:$4 sm:$0xff]  }
 0x53b   : > { %v2332_v18 = vld [vmem:[%s2470_s28 + $0xac] ss:$16 sps:$4 sm:$0xff]  }
 0x53c   : > { %v2959_v38 = vadd.f32 %v1509_v61, %v1503_v37  ;;  %v2333_v61 = vld [vmem:[%s2470_s28 + $0xa0] ss:$16 sps:$4 sm:$0xff]   ;;  %v2334_v37 = vld [vmem:[%s2470_s28 + $0xa8] ss:$16 sps:$4 sm:$0xff]  }
 0x53e   : > { %2279 = vtanh.f32 %v2959_v38 }
 0x548   : > { %v2280_v16 = vpop.eup %2279 }
 0x549   : > { %v1516_v50 = vmul.f32 %v2280_v16, %v1515_v22  ;;  %v2338_v22 = vld [vmem:[%s2470_s28 + $0xc8] ss:$16 sps:$4 sm:$0xff]   ;;  %v2339_v16 = vld [vmem:[%s2470_s28 + $0xe4] ss:$16 sps:$4 sm:$0xff]  }
 0x54b   : > { %2082 = vst [vmem:[%s2481_s16 + $0x20] sm:$0xff] %v1516_v50  ;;  %v1519_v33 = vpack.c.bf16 %v1516_v50, %v1516_v50  ;;  %v2340_v50 = vld [vmem:[%s2470_s28 + $0xec] ss:$16 sps:$4 sm:$0xff]  }
 0x54d   : > { %1553 = vmatmul.mubr.bf16.vlgmr.msra.gmra.mrb[36].mxu0 %v1519_v33  ;;  %1594 = vmatmul.mubr.bf16.vlgmr.msra.gmra.mrb[36].mxu1 %v1519_v33  ;;  %v2341_v33 = vld [vmem:[%s2470_s28 + $0xe0] ss:$16 sps:$4 sm:$0xff]  }
 0x54e   : > { %1628 = vmatpush1.bf16.msra.mxu0 %v2964_v21  ;;  %1669 = vmatpush1.bf16.msra.mxu1 %v2968_v17 }
 0x54f   : > { %1629 = vmatprep.subr.bf16.mxu0 %v2972_v19  ;;  %1670 = vmatprep.subr.bf16.mxu1 %v2976_v23 }
 0x550   : > { %1659 = vmatprep.mubr.bf16.mxu0 %v3141_v24  ;;  %1700 = vmatprep.mubr.bf16.mxu1 %v3141_v24 }
 0x552   : > { %1630 = vmatpush1.bf16.msra.mxu0 %v2982_v34  ;;  %1671 = vmatpush1.bf16.msra.mxu1 %v2986_v36 }
 0x553   : > { %1631 = vmatprep.subr.bf16.mxu0 %v2990_v58  ;;  %1672 = vmatprep.subr.bf16.mxu1 %v2994_v5 }
 0x556   : > { %1632 = vmatpush1.bf16.msra.mxu0 %v2998_v26  ;;  %1673 = vmatpush1.bf16.msra.mxu1 %v3002_v25 }
 0x557   : > { %1633 = vmatprep.subr.bf16.mxu0 %v3006_v42  ;;  %1674 = vmatprep.subr.bf16.mxu1 %v3010_v43 }
 0x55a   : > { %1634 = vmatpush1.bf16.msra.mxu0 %v3014_v44  ;;  %1675 = vmatpush1.bf16.msra.mxu1 %v3018_v45 }
 0x55b   : > { %1635 = vmatprep.subr.bf16.mxu0 %v2589_v59  ;;  %1676 = vmatprep.subr.bf16.mxu1 %v2592_v60 }
 0x55e   : > { %1636 = vmatpush1.bf16.msra.mxu0 %v2599_v62  ;;  %1677 = vmatpush1.bf16.msra.mxu1 %v2602_v63  ;;  %v3151_v62 = vld [vmem:[#allocation14_spill] sm:$0xff] }
 0x55f   : > { %1637 = vmatprep.subr.bf16.mxu0 %v2607_v0  ;;  %1678 = vmatprep.subr.bf16.mxu1 %v2610_v1  ;;  %v3152_v0 = vld [vmem:[#allocation15_spill] sm:$0xff] }
 0x562   : > { %1638 = vmatpush1.bf16.msra.mxu0 %v2613_v2  ;;  %1679 = vmatpush1.bf16.msra.mxu1 %v2618_v3 }
 0x563   : > { %1639 = vmatprep.subr.bf16.mxu0 %v2625_v7  ;;  %1680 = vmatprep.subr.bf16.mxu1 %v2628_v8  ;;  %v3153_v7 = vld [vmem:[#allocation16_spill] sm:$0xff] }
 0x566   : > { %1640 = vmatpush1.bf16.msra.mxu0 %v2635_v10  ;;  %1681 = vmatpush1.bf16.msra.mxu1 %v2638_v11  ;;  %v3154_v10 = vld [vmem:[#allocation17_spill] sm:$0xff] }
 0x567   : > { %1641 = vmatprep.subr.bf16.mxu0 %v2643_v12  ;;  %1682 = vmatprep.subr.bf16.mxu1 %v2646_v13 }
 0x56a   : > { %1642 = vmatpush1.bf16.msra.mxu0 %v2651_v14  ;;  %1683 = vmatpush1.bf16.msra.mxu1 %v2654_v15 }
 0x56b   : > { %1734 = vmatprep.subr.bf16.mxu0 %v2947_v40  ;;  %1775 = vmatprep.subr.bf16.mxu1 %v2951_v41 }
 0x620   : > { %v1554_v59 = vpop.f32.mrb[36].mxu0  ;;  %v1595_v60 = vpop.f32.mrb[36].mxu1 }
 0x621   : > { %v1602_v63 = vadd.f32 %v1554_v59, %v3151_v62  ;;  %v1604_v1 = vadd.f32 %v1595_v60, %v3152_v0  ;;  %v1556_v2 = vpop.f32.mrb[37].mxu0  ;;  %v1597_v3 = vpop.f32.mrb[37].mxu1 }
 0x622   : > { %v1603_v8 = vadd.f32 %v1556_v2, %v3153_v7  ;;  %v1605_v11 = vadd.f32 %v1597_v3, %v3154_v10  ;;  %v1558_v12 = vpop.f32.mrb[38].mxu0  ;;  %v1599_v13 = vpop.f32.mrb[38].mxu1 }
 0x623   : > { %v1611_v14 = vmul.f32 0.5, %v1602_v63  ;;  %v1559_v15 = vpop.f32.mrb[39].mxu0  ;;  %v1600_v48 = vpop.f32.mrb[39].mxu1 }
 0x624   : > { %v1606_v40 = vmul.f32 0.5, %v1603_v8  ;;  %v1619_v41 = vmul.f32 0.5, %v1605_v11 }
 0x625   : > { %2281 = vtanh.f32 %v1611_v14 }
 0x626   : > { %2283 = vtanh.f32 %v1606_v40 }
 0x627   : > { %2285 = vtanh.f32 %v1604_v1 }
 0x628   : > { %2287 = vtanh.f32 %v1619_v41 }
 0x62f   : > { %v2282_v49 = vpop.eup %2281 }
 0x630   : > { %v2284_v51 = vpop.eup %2283  ;;  %v1613_v52 = vmul.f32 0.5, %v2282_v49 }
 0x631   : > { %v1608_v53 = vmul.f32 0.5, %v2284_v51  ;;  %v2286_v55 = vpop.eup %2285 }
 0x632   : > { %v1614_v54 = vadd.f32 0.5, %v1613_v52  ;;  %v2288_v29 = vpop.eup %2287 }
 0x633   : > { %v1609_v56 = vadd.f32 0.5, %v1608_v53  ;;  %v1621_v30 = vmul.f32 0.5, %v2288_v29 }
 0x634   : > { %v1616_v57 = vmul.f32 %v2286_v55, %v1614_v54  ;;  %v3159_v55 = vld [vmem:[#allocation22_spill] sm:$0xff] }
 0x635   : > { %v1610_v27 = vmul.f32 %v1609_v56, %v2959_v38  ;;  %v1622_v4 = vadd.f32 0.5, %v1621_v30  ;;  %v2335_v38 = vld [vmem:[%s2470_s28 + $0xc4] ss:$16 sps:$4 sm:$0xff]  }
 0x637   : > { %v3044_v28 = vadd.f32 %v1616_v57, %v1610_v27  ;;  %v3160_v57 = vld [vmem:[#allocation23_spill] sm:$0xff] }
 0x639   : > { %2289 = vtanh.f32 %v3044_v28 }
 0x643   : > { %v2290_v31 = vpop.eup %2289 }
 0x644   : > { %v1623_v32 = vmul.f32 %v2290_v31, %v1622_v4  ;;  %v3162_v31 = vld [vmem:[#allocation25_spill] sm:$0xff] }
 0x646   : > { %2083 = vst [vmem:[%s2481_s16 + $0x28] sm:$0xff] %v1623_v32  ;;  %v1626_v46 = vpack.c.bf16 %v1623_v32, %v1623_v32 }
 0x648   : > { %1660 = vmatmul.mubr.bf16.vlgmr.msra.gmra.mrb[40].mxu0 %v1626_v46  ;;  %1701 = vmatmul.mubr.bf16.vlgmr.msra.gmra.mrb[40].mxu1 %v1626_v46 }
 0x649   : > { %1735 = vmatpush1.bf16.msra.mxu0 %v2964_v21  ;;  %1776 = vmatpush1.bf16.msra.mxu1 %v2968_v17  ;;  %v2342_v21 = vld [vmem:[%s2470_s28 + $0xe8] ss:$16 sps:$4 sm:$0xff]  }
 0x64a   : > { %1736 = vmatprep.subr.bf16.mxu0 %v2972_v19  ;;  %1777 = vmatprep.subr.bf16.mxu1 %v2976_v23  ;;  %v3155_v23 = vld [vmem:[#allocation18_spill] sm:$0xff] }
 0x64b   : > { %1766 = vmatprep.mubr.bf16.mxu0 %v3141_v24  ;;  %1807 = vmatprep.mubr.bf16.mxu1 %v3141_v24  ;;  %v2327_v24 = vld [vmem:[%s2470_s28 + $0x84] ss:$16 sps:$4 sm:$0xff]  }
 0x64d   : > { %1737 = vmatpush1.bf16.msra.mxu0 %v2982_v34  ;;  %1778 = vmatpush1.bf16.msra.mxu1 %v2986_v36  ;;  %v3156_v36 = vld [vmem:[#allocation19_spill] sm:$0xff] }
 0x64e   : > { %1738 = vmatprep.subr.bf16.mxu0 %v2990_v58  ;;  %1779 = vmatprep.subr.bf16.mxu1 %v2994_v5 }
 0x651   : > { %1739 = vmatpush1.bf16.msra.mxu0 %v2998_v26  ;;  %1780 = vmatpush1.bf16.msra.mxu1 %v3002_v25  ;;  %v3157_v25 = vld [vmem:[#allocation20_spill] sm:$0xff] }
 0x652   : > { %1740 = vmatprep.subr.bf16.mxu0 %v3006_v42  ;;  %1781 = vmatprep.subr.bf16.mxu1 %v3010_v43  ;;  %v3158_v43 = vld [vmem:[#allocation21_spill] sm:$0xff] }
 0x655   : > { %1741 = vmatpush1.bf16.msra.mxu0 %v3014_v44  ;;  %1782 = vmatpush1.bf16.msra.mxu1 %v3018_v45 }
 0x656   : > { %1742 = vmatprep.subr.bf16.mxu0 %v2327_v24  ;;  %1783 = vmatprep.subr.bf16.mxu1 %v2328_v9 }
 0x659   : > { %1743 = vmatpush1.bf16.msra.mxu0 %v2329_v35  ;;  %1784 = vmatpush1.bf16.msra.mxu1 %v2330_v39 }
 0x65a   : > { %1744 = vmatprep.subr.bf16.mxu0 %v2331_v20  ;;  %1785 = vmatprep.subr.bf16.mxu1 %v2332_v18 }
 0x65d   : > { %1745 = vmatpush1.bf16.msra.mxu0 %v2333_v61  ;;  %1786 = vmatpush1.bf16.msra.mxu1 %v2334_v37 }
 0x65e   : > { %1746 = vmatprep.subr.bf16.mxu0 %v2335_v38  ;;  %1787 = vmatprep.subr.bf16.mxu1 %v2336_v6 }
 0x661   : > { %1747 = vmatpush1.bf16.msra.mxu0 %v2337_v47  ;;  %1788 = vmatpush1.bf16.msra.mxu1 %v2338_v22 }
 0x662   : > { %1748 = vmatprep.subr.bf16.mxu0 %v2339_v16  ;;  %1789 = vmatprep.subr.bf16.mxu1 %v2340_v50 }
 0x665   : > { %1749 = vmatpush1.bf16.msra.mxu0 %v2341_v33  ;;  %1790 = vmatpush1.bf16.msra.mxu1 %v2342_v21 }
 0x71b   : > { %v1661_v17 = vpop.f32.mrb[40].mxu0  ;;  %v1702_v19 = vpop.f32.mrb[40].mxu1 }
 0x71c   : > { %v1709_v34 = vadd.f32 %v1661_v17, %v3155_v23  ;;  %v1711_v58 = vadd.f32 %v1702_v19, %v3156_v36  ;;  %v1663_v5 = vpop.f32.mrb[41].mxu0  ;;  %v1704_v26 = vpop.f32.mrb[41].mxu1 }
 0x71d   : > { %v1710_v42 = vadd.f32 %v1663_v5, %v3157_v25  ;;  %v1712_v44 = vadd.f32 %v1704_v26, %v3158_v43  ;;  %v1665_v45 = vpop.f32.mrb[42].mxu0  ;;  %v1706_v59 = vpop.f32.mrb[42].mxu1 }
 0x71e   : > { %v1718_v60 = vmul.f32 0.5, %v1709_v34  ;;  %v1666_v62 = vpop.f32.mrb[43].mxu0  ;;  %v1707_v63 = vpop.f32.mrb[43].mxu1 }
 0x71f   : > { %v1713_v0 = vmul.f32 0.5, %v1710_v42  ;;  %v1726_v1 = vmul.f32 0.5, %v1712_v44 }
 0x720   : > { %2291 = vtanh.f32 %v1718_v60 }
 0x721   : > { %2293 = vtanh.f32 %v1713_v0 }
 0x722   : > { %2295 = vtanh.f32 %v1711_v58 }
 0x723   : > { %2297 = vtanh.f32 %v1726_v1 }
 0x72a   : > { %v2292_v2 = vpop.eup %2291 }
 0x72b   : > { %v2294_v3 = vpop.eup %2293  ;;  %v1720_v7 = vmul.f32 0.5, %v2292_v2 }
 0x72c   : > { %v1715_v8 = vmul.f32 0.5, %v2294_v3  ;;  %v2296_v11 = vpop.eup %2295 }
 0x72d   : > { %v1721_v10 = vadd.f32 0.5, %v1720_v7  ;;  %v2298_v48 = vpop.eup %2297 }
 0x72e   : > { %v1716_v12 = vadd.f32 0.5, %v1715_v8  ;;  %v1728_v40 = vmul.f32 0.5, %v2298_v48 }
 0x72f   : > { %v1723_v13 = vmul.f32 %v2296_v11, %v1721_v10 }
 0x730   : > { %v1717_v14 = vmul.f32 %v1716_v12, %v3044_v28  ;;  %v1729_v41 = vadd.f32 0.5, %v1728_v40  ;;  %v3161_v28 = vld [vmem:[#allocation24_spill] sm:$0xff] }
 0x732   : > { %v1724_v15 = vadd.f32 %v1723_v13, %v1717_v14 }
 0x734   : > { %2299 = vtanh.f32 %v1724_v15 }
 0x73e   : > { %v2300_v49 = vpop.eup %2299 }
 0x73f   : > { %v1730_v51 = vmul.f32 %v2300_v49, %v1729_v41 }
 0x741   : > { %2084 = vst [vmem:[%s2481_s16 + $0x30] sm:$0xff] %v1730_v51  ;;  %v1733_v52 = vpack.c.bf16 %v1730_v51, %v1730_v51 }
 0x743   : > { %1767 = vmatmul.mubr.bf16.vlgmr.msra.gmra.mrb[44].mxu0 %v1733_v52  ;;  %1808 = vmatmul.mubr.bf16.vlgmr.msra.gmra.mrb[44].mxu1 %v1733_v52 }
 0x816   : > { %v1768_v53 = vpop.f32.mrb[44].mxu0  ;;  %v1809_v54 = vpop.f32.mrb[44].mxu1 }
 0x817   : > { %v1816_v56 = vadd.f32 %v1768_v53, %v3159_v55  ;;  %v1818_v27 = vadd.f32 %v1809_v54, %v3160_v57  ;;  %v1770_v29 = vpop.f32.mrb[45].mxu0  ;;  %v1811_v30 = vpop.f32.mrb[45].mxu1 }
 0x818   : > { %v1817_v4 = vadd.f32 %v1770_v29, %v3161_v28  ;;  %v1819_v32 = vadd.f32 %v1811_v30, %v3162_v31  ;;  %v1772_v46 = vpop.f32.mrb[46].mxu0  ;;  %v1813_v24 = vpop.f32.mrb[46].mxu1 }
 0x819   : > { %v1825_v9 = vmul.f32 0.5, %v1816_v56  ;;  %v1773_v35 = vpop.f32.mrb[47].mxu0  ;;  %v1814_v39 = vpop.f32.mrb[47].mxu1 }
 0x81a   : > { %v1820_v20 = vmul.f32 0.5, %v1817_v4  ;;  %v1833_v18 = vmul.f32 0.5, %v1819_v32 }
 0x81b   : > { %2301 = vtanh.f32 %v1825_v9 }
 0x81c   : > { %2303 = vtanh.f32 %v1820_v20 }
 0x81d   : > { %2305 = vtanh.f32 %v1818_v27 }
 0x81e   : > { %2307 = vtanh.f32 %v1833_v18 }
 0x825   : > { %v2302_v61 = vpop.eup %2301 }
 0x826   : > { %v2304_v37 = vpop.eup %2303  ;;  %v1827_v38 = vmul.f32 0.5, %v2302_v61 }
 0x827   : > { %v1822_v6 = vmul.f32 0.5, %v2304_v37  ;;  %v2306_v22 = vpop.eup %2305 }
 0x828   : > { %v1828_v47 = vadd.f32 0.5, %v1827_v38  ;;  %v2308_v17 = vpop.eup %2307 }
 0x829   : > { %v1823_v16 = vadd.f32 0.5, %v1822_v6  ;;  %v1835_v19 = vmul.f32 0.5, %v2308_v17 }
 0x82a   : > { %v1830_v50 = vmul.f32 %v2306_v22, %v1828_v47 }
 0x82b   : > { %v1824_v33 = vmul.f32 %v1823_v16, %v1724_v15  ;;  %v1836_v23 = vadd.f32 0.5, %v1835_v19 }
 0x82d   : > { %v1831_v21 = vadd.f32 %v1830_v50, %v1824_v33 }
 0x82f   : > { %2309 = vtanh.f32 %v1831_v21  ;;  %1841 = vst [vmem:[#allocation3] sm:$0xff] %v1831_v21 }
 0x839   : > { %v2310_v34 = vpop.eup %2309 }
 0x83a   : > { %v1837_v36 = vmul.f32 %v2310_v34, %v1836_v23 }
 0x83c   : > { %2085 = vst [vmem:[%s2481_s16 + $0x38] sm:$0xff] %v1837_v36  ;;  %1840 = vst [vmem:[#allocation2] sm:$0xff] %v1837_v36 }
 0x83d PF: > { %s16_s25 = sadd.s32 1, %s2381_s25   ;;  %s3163_s0 = sld [smem:[#allocation4_spill]] }
 0x83e   : > { %p13_p8 = scmp.ge.s32.totalorder %s16_s25, 6   ;;  %s3164_s21 = smov %s2373_s23 }
 0x83f   : > { %s3165_s22 = smov %s2377_s24  ;;  %s3166_s23 = smov %s3169_s26 }
 0x840   :  { %15 = sbr.rel (!%p13_p8) target bundleno = 4 (0x4), region = 100 }
 0x843   : > { %s3167_s24 = smov %s3163_s0 }

</bundles_post_ra>
